<compile_context>
chip_gen: v7x
topology: tpu7x:2x2x1
jax: 0.10.0
libtpu: 0.0.40
codegen_flags: <defaults>
</compile_context>

<pallas_src>
import jax
import jax.numpy as jnp
from jax.experimental import pallas as pl
from jax.experimental.pallas import tpu as pltpu

C = 128  # unified lane-dense channel width (all logical channel dims zero-padded)


# ----------------------------------------------------------------------------
# Fully fused kernel factory.
#   layer_cfgs: tuple of (K, has_downsample) per BasicBlock.
#   Scratch: two (B, L + 2*halo, C) f32 ping-pong activation buffers; their
#   halo rows are zeroed once and never written -> they provide conv padding.
# ----------------------------------------------------------------------------
def _make_resnet_kernel(B, L, halo, layer_cfgs):
    M = B * L  # batch collapsed into the matmul M dimension

    def conv_bn(src_ref, K, w_ref, s_ref, h_ref, relu, residual=None):
        pad = K // 2
        off = halo - pad
        acc = jnp.zeros((M, C), jnp.float32)
        for k in range(K):  # unrolled shifted matmuls: bf16 in, f32 accumulate
            xs = src_ref[:, off + k:off + k + L, :].reshape(M, C)
            acc = acc + jnp.dot(xs.astype(jnp.bfloat16), w_ref[k],
                                preferred_element_type=jnp.float32)
        out = acc * s_ref[...] + h_ref[...]  # folded BN epilogue (f32)
        if residual is not None:
            out = out + residual
        if relu:
            out = jnp.maximum(out, 0.0)
        return out  # (M, C) f32

    def kernel(*refs):
        it = iter(refs)
        x_ref = next(it)
        layers = []
        for (K, has_ds) in layer_cfgs:
            w1, s1, h1 = next(it), next(it), next(it)
            w2, s2, h2 = next(it), next(it), next(it)
            if has_ds:
                wd, sd, hd = next(it), next(it), next(it)
            else:
                wd = sd = hd = None
            layers.append((K, w1, s1, h1, w2, s2, h2, wd, sd, hd))
        fc_w = next(it)
        fc_b = next(it)
        o_ref = next(it)
        act_a = next(it)
        act_b = next(it)

        # Zero both buffers once; halos stay zero forever ('same' padding).
        act_a[...] = jnp.zeros_like(act_a)
        act_b[...] = jnp.zeros_like(act_b)
        act_a[:, halo:halo + L, :] = x_ref[...].astype(jnp.float32)

        cur, tmp = act_a, act_b
        for (K, w1, s1, h1, w2, s2, h2, wd, sd, hd) in layers:
            out1 = conv_bn(cur, K, w1, s1, h1, relu=True)
            tmp[:, halo:halo + L, :] = out1.reshape(B, L, C)
            if wd is not None:  # downsample: 1x1 conv + BN on the block input
                res = conv_bn(cur, 1, wd, sd, hd, relu=False)
            else:
                res = cur[:, halo:halo + L, :].reshape(M, C)
            out2 = conv_bn(tmp, K, w2, s2, h2, relu=True, residual=res)
            cur[:, halo:halo + L, :] = out2.reshape(B, L, C)  # block output

        # Head: AdaptiveAvgPool1d(1) + flatten + Linear, fused.
        final = cur[:, halo:halo + L, :]          # (B, L, C) f32
        pooled = jnp.mean(final, axis=1)          # (B, C)
        logits = jnp.dot(pooled, fc_w[...],
                         preferred_element_type=jnp.float32) + fc_b[...]
        o_ref[...] = logits.astype(o_ref.dtype)

    return kernel


# ----------------------------------------------------------------------------
# Forward wrapper: single pallas_call, everything resident in VMEM.
# ----------------------------------------------------------------------------
def resnet_forward(params, x_ncl):
    # x_ncl: (B, in_planes, L) PyTorch NCL -> channels-last (B, L, C) bf16.
    B, cin, L = x_ncl.shape
    assert L % 8 == 0, "batch-collapse reshape assumes L multiple of 8"
    x = jnp.transpose(x_ncl, (0, 2, 1))
    x = jnp.pad(x, ((0, 0), (0, 0), (0, C - cin))).astype(jnp.bfloat16)

    args = [x]
    layer_cfgs = []
    for name in ("layer1", "layer2", "layer3"):
        p = params[name]
        K = p["w1"].shape[0]
        has_ds = "wd" in p
        args += [p["w1"], p["s1"], p["h1"], p["w2"], p["s2"], p["h2"]]
        if has_ds:
            args += [p["wd"], p["sd"], p["hd"]]
        layer_cfgs.append((K, has_ds))
    args += [params["fc_w"], params["fc_b"]]
    num_classes = params["fc_w"].shape[1]

    max_pad = max(k // 2 for k, _ in layer_cfgs)
    halo = max(8, -(-max_pad // 8) * 8)  # sublane-aligned interior offset >= pad
    Lp = L + 2 * halo

    kernel = _make_resnet_kernel(B, L, halo, tuple(layer_cfgs))
    vmem = pl.BlockSpec(memory_space=pltpu.MemorySpace.VMEM)

    return pl.pallas_call(
        kernel,
        out_shape=jax.ShapeDtypeStruct((B, num_classes), jnp.float32),
        in_specs=[vmem] * len(args),
        out_specs=vmem,
        scratch_shapes=[
            pltpu.VMEM((B, Lp, C), jnp.float32),  # activation buffer A
            pltpu.VMEM((B, Lp, C), jnp.float32),  # activation buffer B
        ],
    )(*args)


# ----------------------------------------------------------------------------
# Parameter construction (deterministic; shapes follow the PyTorch module,
# zero-padded to the unified 128-channel width; conv weights in bf16).
# ----------------------------------------------------------------------------
def _init_bn(key, c_logical):
    k1, k2, k3, k4 = jax.random.split(key, 4)
    gamma = jax.random.uniform(k1, (c_logical,), jnp.float32, 0.5, 1.5)
    beta = 0.1 * jax.random.normal(k2, (c_logical,), jnp.float32)
    mean = 0.1 * jax.random.normal(k3, (c_logical,), jnp.float32)
    var = jax.random.uniform(k4, (c_logical,), jnp.float32, 0.5, 1.5)
    scale = gamma / jnp.sqrt(var + 1e-5)
    shift = beta - mean * scale
    # Zero scale/shift for padded channels so they stay exactly zero.
    s = jnp.zeros((1, C), jnp.float32).at[0, :c_logical].set(scale)
    h = jnp.zeros((1, C), jnp.float32).at[0, :c_logical].set(shift)
    return s, h


def _init_conv(key, cin, cout, k):
    w = jax.random.normal(key, (k, cin, cout), jnp.float32) * (1.0 / (cin * k)) ** 0.5
    wp = jnp.zeros((k, C, C), jnp.float32).at[:, :cin, :cout].set(w)
    return wp.astype(jnp.bfloat16)  # native MXU input dtype


def init_block(key, cin, cout, k):
    assert k % 2 == 1, "only odd kernel sizes ('same' padding) supported"
    ks = jax.random.split(key, 6)
    p = {}
    p["w1"] = _init_conv(ks[0], cin, cout, k)
    p["s1"], p["h1"] = _init_bn(ks[1], cout)
    p["w2"] = _init_conv(ks[2], cout, cout, k)
    p["s2"], p["h2"] = _init_bn(ks[3], cout)
    if cin != cout:  # downsample: 1x1 conv + BN (stride=1 per _make_layer)
        p["wd"] = _init_conv(ks[4], cin, cout, 1)
        p["sd"], p["hd"] = _init_bn(ks[5], cout)
    return p


def init_resnet(key, kernel_size=(3, 3, 3), num_classes=7, in_planes=10):
    ks = jax.random.split(key, 5)
    return {
        "layer1": init_block(ks[0], in_planes, 64, kernel_size[0]),
        "layer2": init_block(ks[1], 64, 128, kernel_size[1]),
        "layer3": init_block(ks[2], 128, 128, kernel_size[2]),
        "fc_w": 0.05 * jax.random.normal(ks[3], (128, num_classes), jnp.float32),
        "fc_b": 0.05 * jax.random.normal(ks[4], (1, num_classes), jnp.float32),
    }


if __name__ == "__main__":
    key = jax.random.PRNGKey(0)
    kp, kx = jax.random.split(key)
    params = init_resnet(kp, kernel_size=(3, 3, 3), num_classes=7, in_planes=10)
    # Input matches nn.Conv1d expectations: (batch, in_planes, length)
    x = jax.random.normal(kx, (2, 10, 16), jnp.float32)
    fwd = jax.jit(resnet_forward)
    out = jax.block_until_ready(fwd(params, x))
    assert out.shape == (2, 7), out.shape
    print("KERNEL_OK")
</pallas_src>

<mosaic_0001>
module attributes {stable_mosaic.version = 11 : i64} {
  func.func @kernel(%arg0: memref<2x16x128xbf16, #tpu.memory_space<vmem>>, %arg1: memref<3x128x128xbf16, #tpu.memory_space<vmem>>, %arg2: memref<1x128xf32, #tpu.memory_space<vmem>>, %arg3: memref<1x128xf32, #tpu.memory_space<vmem>>, %arg4: memref<3x128x128xbf16, #tpu.memory_space<vmem>>, %arg5: memref<1x128xf32, #tpu.memory_space<vmem>>, %arg6: memref<1x128xf32, #tpu.memory_space<vmem>>, %arg7: memref<1x128x128xbf16, #tpu.memory_space<vmem>>, %arg8: memref<1x128xf32, #tpu.memory_space<vmem>>, %arg9: memref<1x128xf32, #tpu.memory_space<vmem>>, %arg10: memref<3x128x128xbf16, #tpu.memory_space<vmem>>, %arg11: memref<1x128xf32, #tpu.memory_space<vmem>>, %arg12: memref<1x128xf32, #tpu.memory_space<vmem>>, %arg13: memref<3x128x128xbf16, #tpu.memory_space<vmem>>, %arg14: memref<1x128xf32, #tpu.memory_space<vmem>>, %arg15: memref<1x128xf32, #tpu.memory_space<vmem>>, %arg16: memref<1x128x128xbf16, #tpu.memory_space<vmem>>, %arg17: memref<1x128xf32, #tpu.memory_space<vmem>>, %arg18: memref<1x128xf32, #tpu.memory_space<vmem>>, %arg19: memref<3x128x128xbf16, #tpu.memory_space<vmem>>, %arg20: memref<1x128xf32, #tpu.memory_space<vmem>>, %arg21: memref<1x128xf32, #tpu.memory_space<vmem>>, %arg22: memref<3x128x128xbf16, #tpu.memory_space<vmem>>, %arg23: memref<1x128xf32, #tpu.memory_space<vmem>>, %arg24: memref<1x128xf32, #tpu.memory_space<vmem>>, %arg25: memref<128x7xf32, #tpu.memory_space<vmem>>, %arg26: memref<1x7xf32, #tpu.memory_space<vmem>>, %arg27: memref<2x7xf32, #tpu.memory_space<vmem>>, %arg28: memref<2x32x128xf32, #tpu.memory_space<vmem>>, %arg29: memref<2x32x128xf32, #tpu.memory_space<vmem>>) attributes {dimension_semantics = [], scalar_prefetch = 0 : i64, scratch_operands = 2 : i64, tpu.core_type = #tpu.core_type<tc>} {
    %cst = arith.constant 0.000000e+00 : f32
    %0 = vector.broadcast %cst : f32 to vector<2x32x128xf32>
    %c0 = arith.constant 0 : index
    %c0_0 = arith.constant 0 : index
    %c0_1 = arith.constant 0 : index
    %1 = vector.load %arg28[%c0, %c0_0, %c0_1] : memref<2x32x128xf32, #tpu.memory_space<vmem>>, vector<2x32x128xf32>
    tpu.vector_store %arg28[%c0, %c0_0, %c0_1], %0 {strides = array<i32>} : memref<2x32x128xf32, #tpu.memory_space<vmem>>, vector<2x32x128xf32>,
    %cst_2 = arith.constant 0.000000e+00 : f32
    %2 = vector.broadcast %cst_2 : f32 to vector<2x32x128xf32>
    %c0_3 = arith.constant 0 : index
    %c0_4 = arith.constant 0 : index
    %c0_5 = arith.constant 0 : index
    %3 = vector.load %arg29[%c0_3, %c0_4, %c0_5] : memref<2x32x128xf32, #tpu.memory_space<vmem>>, vector<2x32x128xf32>
    tpu.vector_store %arg29[%c0_3, %c0_4, %c0_5], %2 {strides = array<i32>} : memref<2x32x128xf32, #tpu.memory_space<vmem>>, vector<2x32x128xf32>,
    %c0_6 = arith.constant 0 : index
    %c0_7 = arith.constant 0 : index
    %c0_8 = arith.constant 0 : index
    %4 = vector.load %arg0[%c0_6, %c0_7, %c0_8] : memref<2x16x128xbf16, #tpu.memory_space<vmem>>, vector<2x16x128xbf16>
    %5 = arith.extf %4 : vector<2x16x128xbf16> to vector<2x16x128xf32>
    %c0_9 = arith.constant 0 : index
    %c8 = arith.constant 8 : index
    %c0_10 = arith.constant 0 : index
    %6 = vector.load %arg28[%c0_9, %c8, %c0_10] : memref<2x32x128xf32, #tpu.memory_space<vmem>>, vector<2x16x128xf32>
    tpu.vector_store %arg28[%c0_9, %c8, %c0_10], %5 {strides = array<i32>} : memref<2x32x128xf32, #tpu.memory_space<vmem>>, vector<2x16x128xf32>,
    %cst_11 = arith.constant 0.000000e+00 : f32
    %7 = vector.broadcast %cst_11 : f32 to vector<32x128xf32>
    %c0_12 = arith.constant 0 : index
    %c7 = arith.constant 7 : index
    %c0_13 = arith.constant 0 : index
    %8 = vector.load %arg28[%c0_12, %c7, %c0_13] : memref<2x32x128xf32, #tpu.memory_space<vmem>>, vector<2x16x128xf32>
    %9 = vector.shape_cast %8 : vector<2x16x128xf32> to vector<32x128xf32>
    %10 = arith.truncf %9 : vector<32x128xf32> to vector<32x128xbf16>
    %c0_14 = arith.constant 0 : index
    %c0_15 = arith.constant 0 : index
    %c0_16 = arith.constant 0 : index
    %11 = vector.load %arg1[%c0_14, %c0_15, %c0_16] : memref<3x128x128xbf16, #tpu.memory_space<vmem>>, vector<1x128x128xbf16>
    %12 = vector.shape_cast %11 : vector<1x128x128xbf16> to vector<128x128xbf16>
    %cst_17 = arith.constant dense<0.000000e+00> : vector<32x128xf32>
    %13 = tpu.matmul %10, %12, %cst_17 {dimension_numbers = #tpu.dot_dimension_numbers<[1], [0], [0], [1], [0, 0, 1, 1], [], []>} : vector<32x128xbf16>, vector<128x128xbf16>, vector<32x128xf32> -> vector<32x128xf32>
    %14 = arith.addf %7, %13 : vector<32x128xf32>
    %c0_18 = arith.constant 0 : index
    %c8_19 = arith.constant 8 : index
    %c0_20 = arith.constant 0 : index
    %15 = vector.load %arg28[%c0_18, %c8_19, %c0_20] : memref<2x32x128xf32, #tpu.memory_space<vmem>>, vector<2x16x128xf32>
    %16 = vector.shape_cast %15 : vector<2x16x128xf32> to vector<32x128xf32>
    %17 = arith.truncf %16 : vector<32x128xf32> to vector<32x128xbf16>
    %c1 = arith.constant 1 : index
    %c0_21 = arith.constant 0 : index
    %c0_22 = arith.constant 0 : index
    %18 = vector.load %arg1[%c1, %c0_21, %c0_22] : memref<3x128x128xbf16, #tpu.memory_space<vmem>>, vector<1x128x128xbf16>
    %19 = vector.shape_cast %18 : vector<1x128x128xbf16> to vector<128x128xbf16>
    %cst_23 = arith.constant dense<0.000000e+00> : vector<32x128xf32>
    %20 = tpu.matmul %17, %19, %cst_23 {dimension_numbers = #tpu.dot_dimension_numbers<[1], [0], [0], [1], [0, 0, 1, 1], [], []>} : vector<32x128xbf16>, vector<128x128xbf16>, vector<32x128xf32> -> vector<32x128xf32>
    %21 = arith.addf %14, %20 : vector<32x128xf32>
    %c0_24 = arith.constant 0 : index
    %c9 = arith.constant 9 : index
    %c0_25 = arith.constant 0 : index
    %22 = vector.load %arg28[%c0_24, %c9, %c0_25] : memref<2x32x128xf32, #tpu.memory_space<vmem>>, vector<2x16x128xf32>
    %23 = vector.shape_cast %22 : vector<2x16x128xf32> to vector<32x128xf32>
    %24 = arith.truncf %23 : vector<32x128xf32> to vector<32x128xbf16>
    %c2 = arith.constant 2 : index
    %c0_26 = arith.constant 0 : index
    %c0_27 = arith.constant 0 : index
    %25 = vector.load %arg1[%c2, %c0_26, %c0_27] : memref<3x128x128xbf16, #tpu.memory_space<vmem>>, vector<1x128x128xbf16>
    %26 = vector.shape_cast %25 : vector<1x128x128xbf16> to vector<128x128xbf16>
    %cst_28 = arith.constant dense<0.000000e+00> : vector<32x128xf32>
    %27 = tpu.matmul %24, %26, %cst_28 {dimension_numbers = #tpu.dot_dimension_numbers<[1], [0], [0], [1], [0, 0, 1, 1], [], []>} : vector<32x128xbf16>, vector<128x128xbf16>, vector<32x128xf32> -> vector<32x128xf32>
    %28 = arith.addf %21, %27 : vector<32x128xf32>
    %c0_29 = arith.constant 0 : index
    %c0_30 = arith.constant 0 : index
    %29 = vector.load %arg2[%c0_29, %c0_30] : memref<1x128xf32, #tpu.memory_space<vmem>>, vector<1x128xf32>
    %30 = vector.broadcast %29 : vector<1x128xf32> to vector<32x128xf32>
    %31 = arith.mulf %28, %30 : vector<32x128xf32>
    %c0_31 = arith.constant 0 : index
    %c0_32 = arith.constant 0 : index
    %32 = vector.load %arg3[%c0_31, %c0_32] : memref<1x128xf32, #tpu.memory_space<vmem>>, vector<1x128xf32>
    %33 = vector.broadcast %32 : vector<1x128xf32> to vector<32x128xf32>
    %34 = arith.addf %31, %33 : vector<32x128xf32>
    %cst_33 = arith.constant 0.000000e+00 : f32
    %35 = vector.broadcast %cst_33 : f32 to vector<32x128xf32>
    %36 = arith.maximumf %34, %35 : vector<32x128xf32>
    %37 = vector.shape_cast %36 : vector<32x128xf32> to vector<2x16x128xf32>
    %c0_34 = arith.constant 0 : index
    %c8_35 = arith.constant 8 : index
    %c0_36 = arith.constant 0 : index
    %38 = vector.load %arg29[%c0_34, %c8_35, %c0_36] : memref<2x32x128xf32, #tpu.memory_space<vmem>>, vector<2x16x128xf32>
    tpu.vector_store %arg29[%c0_34, %c8_35, %c0_36], %37 {strides = array<i32>} : memref<2x32x128xf32, #tpu.memory_space<vmem>>, vector<2x16x128xf32>,
    %cst_37 = arith.constant 0.000000e+00 : f32
    %39 = vector.broadcast %cst_37 : f32 to vector<32x128xf32>
    %c0_38 = arith.constant 0 : index
    %c8_39 = arith.constant 8 : index
    %c0_40 = arith.constant 0 : index
    %40 = vector.load %arg28[%c0_38, %c8_39, %c0_40] : memref<2x32x128xf32, #tpu.memory_space<vmem>>, vector<2x16x128xf32>
    %41 = vector.shape_cast %40 : vector<2x16x128xf32> to vector<32x128xf32>
    %42 = arith.truncf %41 : vector<32x128xf32> to vector<32x128xbf16>
    %c0_41 = arith.constant 0 : index
    %c0_42 = arith.constant 0 : index
    %c0_43 = arith.constant 0 : index
    %43 = vector.load %arg7[%c0_41, %c0_42, %c0_43] : memref<1x128x128xbf16, #tpu.memory_space<vmem>>, vector<1x128x128xbf16>
    %44 = vector.shape_cast %43 : vector<1x128x128xbf16> to vector<128x128xbf16>
    %cst_44 = arith.constant dense<0.000000e+00> : vector<32x128xf32>
    %45 = tpu.matmul %42, %44, %cst_44 {dimension_numbers = #tpu.dot_dimension_numbers<[1], [0], [0], [1], [0, 0, 1, 1], [], []>} : vector<32x128xbf16>, vector<128x128xbf16>, vector<32x128xf32> -> vector<32x128xf32>
    %46 = arith.addf %39, %45 : vector<32x128xf32>
    %c0_45 = arith.constant 0 : index
    %c0_46 = arith.constant 0 : index
    %47 = vector.load %arg8[%c0_45, %c0_46] : memref<1x128xf32, #tpu.memory_space<vmem>>, vector<1x128xf32>
    %48 = vector.broadcast %47 : vector<1x128xf32> to vector<32x128xf32>
    %49 = arith.mulf %46, %48 : vector<32x128xf32>
    %c0_47 = arith.constant 0 : index
    %c0_48 = arith.constant 0 : index
    %50 = vector.load %arg9[%c0_47, %c0_48] : memref<1x128xf32, #tpu.memory_space<vmem>>, vector<1x128xf32>
    %51 = vector.broadcast %50 : vector<1x128xf32> to vector<32x128xf32>
    %52 = arith.addf %49, %51 : vector<32x128xf32>
    %cst_49 = arith.constant 0.000000e+00 : f32
    %53 = vector.broadcast %cst_49 : f32 to vector<32x128xf32>
    %c0_50 = arith.constant 0 : index
    %c7_51 = arith.constant 7 : index
    %c0_52 = arith.constant 0 : index
    %54 = vector.load %arg29[%c0_50, %c7_51, %c0_52] : memref<2x32x128xf32, #tpu.memory_space<vmem>>, vector<2x16x128xf32>
    %55 = vector.shape_cast %54 : vector<2x16x128xf32> to vector<32x128xf32>
    %56 = arith.truncf %55 : vector<32x128xf32> to vector<32x128xbf16>
    %c0_53 = arith.constant 0 : index
    %c0_54 = arith.constant 0 : index
    %c0_55 = arith.constant 0 : index
    %57 = vector.load %arg4[%c0_53, %c0_54, %c0_55] : memref<3x128x128xbf16, #tpu.memory_space<vmem>>, vector<1x128x128xbf16>
    %58 = vector.shape_cast %57 : vector<1x128x128xbf16> to vector<128x128xbf16>
    %cst_56 = arith.constant dense<0.000000e+00> : vector<32x128xf32>
    %59 = tpu.matmul %56, %58, %cst_56 {dimension_numbers = #tpu.dot_dimension_numbers<[1], [0], [0], [1], [0, 0, 1, 1], [], []>} : vector<32x128xbf16>, vector<128x128xbf16>, vector<32x128xf32> -> vector<32x128xf32>
    %60 = arith.addf %53, %59 : vector<32x128xf32>
    %c0_57 = arith.constant 0 : index
    %c8_58 = arith.constant 8 : index
    %c0_59 = arith.constant 0 : index
    %61 = vector.load %arg29[%c0_57, %c8_58, %c0_59] : memref<2x32x128xf32, #tpu.memory_space<vmem>>, vector<2x16x128xf32>
    %62 = vector.shape_cast %61 : vector<2x16x128xf32> to vector<32x128xf32>
    %63 = arith.truncf %62 : vector<32x128xf32> to vector<32x128xbf16>
    %c1_60 = arith.constant 1 : index
    %c0_61 = arith.constant 0 : index
    %c0_62 = arith.constant 0 : index
    %64 = vector.load %arg4[%c1_60, %c0_61, %c0_62] : memref<3x128x128xbf16, #tpu.memory_space<vmem>>, vector<1x128x128xbf16>
    %65 = vector.shape_cast %64 : vector<1x128x128xbf16> to vector<128x128xbf16>
    %cst_63 = arith.constant dense<0.000000e+00> : vector<32x128xf32>
    %66 = tpu.matmul %63, %65, %cst_63 {dimension_numbers = #tpu.dot_dimension_numbers<[1], [0], [0], [1], [0, 0, 1, 1], [], []>} : vector<32x128xbf16>, vector<128x128xbf16>, vector<32x128xf32> -> vector<32x128xf32>
    %67 = arith.addf %60, %66 : vector<32x128xf32>
    %c0_64 = arith.constant 0 : index
    %c9_65 = arith.constant 9 : index
    %c0_66 = arith.constant 0 : index
    %68 = vector.load %arg29[%c0_64, %c9_65, %c0_66] : memref<2x32x128xf32, #tpu.memory_space<vmem>>, vector<2x16x128xf32>
    %69 = vector.shape_cast %68 : vector<2x16x128xf32> to vector<32x128xf32>
    %70 = arith.truncf %69 : vector<32x128xf32> to vector<32x128xbf16>
    %c2_67 = arith.constant 2 : index
    %c0_68 = arith.constant 0 : index
    %c0_69 = arith.constant 0 : index
    %71 = vector.load %arg4[%c2_67, %c0_68, %c0_69] : memref<3x128x128xbf16, #tpu.memory_space<vmem>>, vector<1x128x128xbf16>
    %72 = vector.shape_cast %71 : vector<1x128x128xbf16> to vector<128x128xbf16>
    %cst_70 = arith.constant dense<0.000000e+00> : vector<32x128xf32>
    %73 = tpu.matmul %70, %72, %cst_70 {dimension_numbers = #tpu.dot_dimension_numbers<[1], [0], [0], [1], [0, 0, 1, 1], [], []>} : vector<32x128xbf16>, vector<128x128xbf16>, vector<32x128xf32> -> vector<32x128xf32>
    %74 = arith.addf %67, %73 : vector<32x128xf32>
    %c0_71 = arith.constant 0 : index
    %c0_72 = arith.constant 0 : index
    %75 = vector.load %arg5[%c0_71, %c0_72] : memref<1x128xf32, #tpu.memory_space<vmem>>, vector<1x128xf32>
    %76 = vector.broadcast %75 : vector<1x128xf32> to vector<32x128xf32>
    %77 = arith.mulf %74, %76 : vector<32x128xf32>
    %c0_73 = arith.constant 0 : index
    %c0_74 = arith.constant 0 : index
    %78 = vector.load %arg6[%c0_73, %c0_74] : memref<1x128xf32, #tpu.memory_space<vmem>>, vector<1x128xf32>
    %79 = vector.broadcast %78 : vector<1x128xf32> to vector<32x128xf32>
    %80 = arith.addf %77, %79 : vector<32x128xf32>
    %81 = arith.addf %80, %52 : vector<32x128xf32>
    %cst_75 = arith.constant 0.000000e+00 : f32
    %82 = vector.broadcast %cst_75 : f32 to vector<32x128xf32>
    %83 = arith.maximumf %81, %82 : vector<32x128xf32>
    %84 = vector.shape_cast %83 : vector<32x128xf32> to vector<2x16x128xf32>
    %c0_76 = arith.constant 0 : index
    %c8_77 = arith.constant 8 : index
    %c0_78 = arith.constant 0 : index
    %85 = vector.load %arg28[%c0_76, %c8_77, %c0_78] : memref<2x32x128xf32, #tpu.memory_space<vmem>>, vector<2x16x128xf32>
    tpu.vector_store %arg28[%c0_76, %c8_77, %c0_78], %84 {strides = array<i32>} : memref<2x32x128xf32, #tpu.memory_space<vmem>>, vector<2x16x128xf32>,
    %cst_79 = arith.constant 0.000000e+00 : f32
    %86 = vector.broadcast %cst_79 : f32 to vector<32x128xf32>
    %c0_80 = arith.constant 0 : index
    %c7_81 = arith.constant 7 : index
    %c0_82 = arith.constant 0 : index
    %87 = vector.load %arg28[%c0_80, %c7_81, %c0_82] : memref<2x32x128xf32, #tpu.memory_space<vmem>>, vector<2x16x128xf32>
    %88 = vector.shape_cast %87 : vector<2x16x128xf32> to vector<32x128xf32>
    %89 = arith.truncf %88 : vector<32x128xf32> to vector<32x128xbf16>
    %c0_83 = arith.constant 0 : index
    %c0_84 = arith.constant 0 : index
    %c0_85 = arith.constant 0 : index
    %90 = vector.load %arg10[%c0_83, %c0_84, %c0_85] : memref<3x128x128xbf16, #tpu.memory_space<vmem>>, vector<1x128x128xbf16>
    %91 = vector.shape_cast %90 : vector<1x128x128xbf16> to vector<128x128xbf16>
    %cst_86 = arith.constant dense<0.000000e+00> : vector<32x128xf32>
    %92 = tpu.matmul %89, %91, %cst_86 {dimension_numbers = #tpu.dot_dimension_numbers<[1], [0], [0], [1], [0, 0, 1, 1], [], []>} : vector<32x128xbf16>, vector<128x128xbf16>, vector<32x128xf32> -> vector<32x128xf32>
    %93 = arith.addf %86, %92 : vector<32x128xf32>
    %c0_87 = arith.constant 0 : index
    %c8_88 = arith.constant 8 : index
    %c0_89 = arith.constant 0 : index
    %94 = vector.load %arg28[%c0_87, %c8_88, %c0_89] : memref<2x32x128xf32, #tpu.memory_space<vmem>>, vector<2x16x128xf32>
    %95 = vector.shape_cast %94 : vector<2x16x128xf32> to vector<32x128xf32>
    %96 = arith.truncf %95 : vector<32x128xf32> to vector<32x128xbf16>
    %c1_90 = arith.constant 1 : index
    %c0_91 = arith.constant 0 : index
    %c0_92 = arith.constant 0 : index
    %97 = vector.load %arg10[%c1_90, %c0_91, %c0_92] : memref<3x128x128xbf16, #tpu.memory_space<vmem>>, vector<1x128x128xbf16>
    %98 = vector.shape_cast %97 : vector<1x128x128xbf16> to vector<128x128xbf16>
    %cst_93 = arith.constant dense<0.000000e+00> : vector<32x128xf32>
    %99 = tpu.matmul %96, %98, %cst_93 {dimension_numbers = #tpu.dot_dimension_numbers<[1], [0], [0], [1], [0, 0, 1, 1], [], []>} : vector<32x128xbf16>, vector<128x128xbf16>, vector<32x128xf32> -> vector<32x128xf32>
    %100 = arith.addf %93, %99 : vector<32x128xf32>
    %c0_94 = arith.constant 0 : index
    %c9_95 = arith.constant 9 : index
    %c0_96 = arith.constant 0 : index
    %101 = vector.load %arg28[%c0_94, %c9_95, %c0_96] : memref<2x32x128xf32, #tpu.memory_space<vmem>>, vector<2x16x128xf32>
    %102 = vector.shape_cast %101 : vector<2x16x128xf32> to vector<32x128xf32>
    %103 = arith.truncf %102 : vector<32x128xf32> to vector<32x128xbf16>
    %c2_97 = arith.constant 2 : index
    %c0_98 = arith.constant 0 : index
    %c0_99 = arith.constant 0 : index
    %104 = vector.load %arg10[%c2_97, %c0_98, %c0_99] : memref<3x128x128xbf16, #tpu.memory_space<vmem>>, vector<1x128x128xbf16>
    %105 = vector.shape_cast %104 : vector<1x128x128xbf16> to vector<128x128xbf16>
    %cst_100 = arith.constant dense<0.000000e+00> : vector<32x128xf32>
    %106 = tpu.matmul %103, %105, %cst_100 {dimension_numbers = #tpu.dot_dimension_numbers<[1], [0], [0], [1], [0, 0, 1, 1], [], []>} : vector<32x128xbf16>, vector<128x128xbf16>, vector<32x128xf32> -> vector<32x128xf32>
    %107 = arith.addf %100, %106 : vector<32x128xf32>
    %c0_101 = arith.constant 0 : index
    %c0_102 = arith.constant 0 : index
    %108 = vector.load %arg11[%c0_101, %c0_102] : memref<1x128xf32, #tpu.memory_space<vmem>>, vector<1x128xf32>
    %109 = vector.broadcast %108 : vector<1x128xf32> to vector<32x128xf32>
    %110 = arith.mulf %107, %109 : vector<32x128xf32>
    %c0_103 = arith.constant 0 : index
    %c0_104 = arith.constant 0 : index
    %111 = vector.load %arg12[%c0_103, %c0_104] : memref<1x128xf32, #tpu.memory_space<vmem>>, vector<1x128xf32>
    %112 = vector.broadcast %111 : vector<1x128xf32> to vector<32x128xf32>
    %113 = arith.addf %110, %112 : vector<32x128xf32>
    %cst_105 = arith.constant 0.000000e+00 : f32
    %114 = vector.broadcast %cst_105 : f32 to vector<32x128xf32>
    %115 = arith.maximumf %113, %114 : vector<32x128xf32>
    %116 = vector.shape_cast %115 : vector<32x128xf32> to vector<2x16x128xf32>
    %c0_106 = arith.constant 0 : index
    %c8_107 = arith.constant 8 : index
    %c0_108 = arith.constant 0 : index
    %117 = vector.load %arg29[%c0_106, %c8_107, %c0_108] : memref<2x32x128xf32, #tpu.memory_space<vmem>>, vector<2x16x128xf32>
    tpu.vector_store %arg29[%c0_106, %c8_107, %c0_108], %116 {strides = array<i32>} : memref<2x32x128xf32, #tpu.memory_space<vmem>>, vector<2x16x128xf32>,
    %cst_109 = arith.constant 0.000000e+00 : f32
    %118 = vector.broadcast %cst_109 : f32 to vector<32x128xf32>
    %c0_110 = arith.constant 0 : index
    %c8_111 = arith.constant 8 : index
    %c0_112 = arith.constant 0 : index
    %119 = vector.load %arg28[%c0_110, %c8_111, %c0_112] : memref<2x32x128xf32, #tpu.memory_space<vmem>>, vector<2x16x128xf32>
    %120 = vector.shape_cast %119 : vector<2x16x128xf32> to vector<32x128xf32>
    %121 = arith.truncf %120 : vector<32x128xf32> to vector<32x128xbf16>
    %c0_113 = arith.constant 0 : index
    %c0_114 = arith.constant 0 : index
    %c0_115 = arith.constant 0 : index
    %122 = vector.load %arg16[%c0_113, %c0_114, %c0_115] : memref<1x128x128xbf16, #tpu.memory_space<vmem>>, vector<1x128x128xbf16>
    %123 = vector.shape_cast %122 : vector<1x128x128xbf16> to vector<128x128xbf16>
    %cst_116 = arith.constant dense<0.000000e+00> : vector<32x128xf32>
    %124 = tpu.matmul %121, %123, %cst_116 {dimension_numbers = #tpu.dot_dimension_numbers<[1], [0], [0], [1], [0, 0, 1, 1], [], []>} : vector<32x128xbf16>, vector<128x128xbf16>, vector<32x128xf32> -> vector<32x128xf32>
    %125 = arith.addf %118, %124 : vector<32x128xf32>
    %c0_117 = arith.constant 0 : index
    %c0_118 = arith.constant 0 : index
    %126 = vector.load %arg17[%c0_117, %c0_118] : memref<1x128xf32, #tpu.memory_space<vmem>>, vector<1x128xf32>
    %127 = vector.broadcast %126 : vector<1x128xf32> to vector<32x128xf32>
    %128 = arith.mulf %125, %127 : vector<32x128xf32>
    %c0_119 = arith.constant 0 : index
    %c0_120 = arith.constant 0 : index
    %129 = vector.load %arg18[%c0_119, %c0_120] : memref<1x128xf32, #tpu.memory_space<vmem>>, vector<1x128xf32>
    %130 = vector.broadcast %129 : vector<1x128xf32> to vector<32x128xf32>
    %131 = arith.addf %128, %130 : vector<32x128xf32>
    %cst_121 = arith.constant 0.000000e+00 : f32
    %132 = vector.broadcast %cst_121 : f32 to vector<32x128xf32>
    %c0_122 = arith.constant 0 : index
    %c7_123 = arith.constant 7 : index
    %c0_124 = arith.constant 0 : index
    %133 = vector.load %arg29[%c0_122, %c7_123, %c0_124] : memref<2x32x128xf32, #tpu.memory_space<vmem>>, vector<2x16x128xf32>
    %134 = vector.shape_cast %133 : vector<2x16x128xf32> to vector<32x128xf32>
    %135 = arith.truncf %134 : vector<32x128xf32> to vector<32x128xbf16>
    %c0_125 = arith.constant 0 : index
    %c0_126 = arith.constant 0 : index
    %c0_127 = arith.constant 0 : index
    %136 = vector.load %arg13[%c0_125, %c0_126, %c0_127] : memref<3x128x128xbf16, #tpu.memory_space<vmem>>, vector<1x128x128xbf16>
    %137 = vector.shape_cast %136 : vector<1x128x128xbf16> to vector<128x128xbf16>
    %cst_128 = arith.constant dense<0.000000e+00> : vector<32x128xf32>
    %138 = tpu.matmul %135, %137, %cst_128 {dimension_numbers = #tpu.dot_dimension_numbers<[1], [0], [0], [1], [0, 0, 1, 1], [], []>} : vector<32x128xbf16>, vector<128x128xbf16>, vector<32x128xf32> -> vector<32x128xf32>
    %139 = arith.addf %132, %138 : vector<32x128xf32>
    %c0_129 = arith.constant 0 : index
    %c8_130 = arith.constant 8 : index
    %c0_131 = arith.constant 0 : index
    %140 = vector.load %arg29[%c0_129, %c8_130, %c0_131] : memref<2x32x128xf32, #tpu.memory_space<vmem>>, vector<2x16x128xf32>
    %141 = vector.shape_cast %140 : vector<2x16x128xf32> to vector<32x128xf32>
    %142 = arith.truncf %141 : vector<32x128xf32> to vector<32x128xbf16>
    %c1_132 = arith.constant 1 : index
    %c0_133 = arith.constant 0 : index
    %c0_134 = arith.constant 0 : index
    %143 = vector.load %arg13[%c1_132, %c0_133, %c0_134] : memref<3x128x128xbf16, #tpu.memory_space<vmem>>, vector<1x128x128xbf16>
    %144 = vector.shape_cast %143 : vector<1x128x128xbf16> to vector<128x128xbf16>
    %cst_135 = arith.constant dense<0.000000e+00> : vector<32x128xf32>
    %145 = tpu.matmul %142, %144, %cst_135 {dimension_numbers = #tpu.dot_dimension_numbers<[1], [0], [0], [1], [0, 0, 1, 1], [], []>} : vector<32x128xbf16>, vector<128x128xbf16>, vector<32x128xf32> -> vector<32x128xf32>
    %146 = arith.addf %139, %145 : vector<32x128xf32>
    %c0_136 = arith.constant 0 : index
    %c9_137 = arith.constant 9 : index
    %c0_138 = arith.constant 0 : index
    %147 = vector.load %arg29[%c0_136, %c9_137, %c0_138] : memref<2x32x128xf32, #tpu.memory_space<vmem>>, vector<2x16x128xf32>
    %148 = vector.shape_cast %147 : vector<2x16x128xf32> to vector<32x128xf32>
    %149 = arith.truncf %148 : vector<32x128xf32> to vector<32x128xbf16>
    %c2_139 = arith.constant 2 : index
    %c0_140 = arith.constant 0 : index
    %c0_141 = arith.constant 0 : index
    %150 = vector.load %arg13[%c2_139, %c0_140, %c0_141] : memref<3x128x128xbf16, #tpu.memory_space<vmem>>, vector<1x128x128xbf16>
    %151 = vector.shape_cast %150 : vector<1x128x128xbf16> to vector<128x128xbf16>
    %cst_142 = arith.constant dense<0.000000e+00> : vector<32x128xf32>
    %152 = tpu.matmul %149, %151, %cst_142 {dimension_numbers = #tpu.dot_dimension_numbers<[1], [0], [0], [1], [0, 0, 1, 1], [], []>} : vector<32x128xbf16>, vector<128x128xbf16>, vector<32x128xf32> -> vector<32x128xf32>
    %153 = arith.addf %146, %152 : vector<32x128xf32>
    %c0_143 = arith.constant 0 : index
    %c0_144 = arith.constant 0 : index
    %154 = vector.load %arg14[%c0_143, %c0_144] : memref<1x128xf32, #tpu.memory_space<vmem>>, vector<1x128xf32>
    %155 = vector.broadcast %154 : vector<1x128xf32> to vector<32x128xf32>
    %156 = arith.mulf %153, %155 : vector<32x128xf32>
    %c0_145 = arith.constant 0 : index
    %c0_146 = arith.constant 0 : index
    %157 = vector.load %arg15[%c0_145, %c0_146] : memref<1x128xf32, #tpu.memory_space<vmem>>, vector<1x128xf32>
    %158 = vector.broadcast %157 : vector<1x128xf32> to vector<32x128xf32>
    %159 = arith.addf %156, %158 : vector<32x128xf32>
    %160 = arith.addf %159, %131 : vector<32x128xf32>
    %cst_147 = arith.constant 0.000000e+00 : f32
    %161 = vector.broadcast %cst_147 : f32 to vector<32x128xf32>
    %162 = arith.maximumf %160, %161 : vector<32x128xf32>
    %163 = vector.shape_cast %162 : vector<32x128xf32> to vector<2x16x128xf32>
    %c0_148 = arith.constant 0 : index
    %c8_149 = arith.constant 8 : index
    %c0_150 = arith.constant 0 : index
    %164 = vector.load %arg28[%c0_148, %c8_149, %c0_150] : memref<2x32x128xf32, #tpu.memory_space<vmem>>, vector<2x16x128xf32>
    tpu.vector_store %arg28[%c0_148, %c8_149, %c0_150], %163 {strides = array<i32>} : memref<2x32x128xf32, #tpu.memory_space<vmem>>, vector<2x16x128xf32>,
    %cst_151 = arith.constant 0.000000e+00 : f32
    %165 = vector.broadcast %cst_151 : f32 to vector<32x128xf32>
    %c0_152 = arith.constant 0 : index
    %c7_153 = arith.constant 7 : index
    %c0_154 = arith.constant 0 : index
    %166 = vector.load %arg28[%c0_152, %c7_153, %c0_154] : memref<2x32x128xf32, #tpu.memory_space<vmem>>, vector<2x16x128xf32>
    %167 = vector.shape_cast %166 : vector<2x16x128xf32> to vector<32x128xf32>
    %168 = arith.truncf %167 : vector<32x128xf32> to vector<32x128xbf16>
    %c0_155 = arith.constant 0 : index
    %c0_156 = arith.constant 0 : index
    %c0_157 = arith.constant 0 : index
    %169 = vector.load %arg19[%c0_155, %c0_156, %c0_157] : memref<3x128x128xbf16, #tpu.memory_space<vmem>>, vector<1x128x128xbf16>
    %170 = vector.shape_cast %169 : vector<1x128x128xbf16> to vector<128x128xbf16>
    %cst_158 = arith.constant dense<0.000000e+00> : vector<32x128xf32>
    %171 = tpu.matmul %168, %170, %cst_158 {dimension_numbers = #tpu.dot_dimension_numbers<[1], [0], [0], [1], [0, 0, 1, 1], [], []>} : vector<32x128xbf16>, vector<128x128xbf16>, vector<32x128xf32> -> vector<32x128xf32>
    %172 = arith.addf %165, %171 : vector<32x128xf32>
    %c0_159 = arith.constant 0 : index
    %c8_160 = arith.constant 8 : index
    %c0_161 = arith.constant 0 : index
    %173 = vector.load %arg28[%c0_159, %c8_160, %c0_161] : memref<2x32x128xf32, #tpu.memory_space<vmem>>, vector<2x16x128xf32>
    %174 = vector.shape_cast %173 : vector<2x16x128xf32> to vector<32x128xf32>
    %175 = arith.truncf %174 : vector<32x128xf32> to vector<32x128xbf16>
    %c1_162 = arith.constant 1 : index
    %c0_163 = arith.constant 0 : index
    %c0_164 = arith.constant 0 : index
    %176 = vector.load %arg19[%c1_162, %c0_163, %c0_164] : memref<3x128x128xbf16, #tpu.memory_space<vmem>>, vector<1x128x128xbf16>
    %177 = vector.shape_cast %176 : vector<1x128x128xbf16> to vector<128x128xbf16>
    %cst_165 = arith.constant dense<0.000000e+00> : vector<32x128xf32>
    %178 = tpu.matmul %175, %177, %cst_165 {dimension_numbers = #tpu.dot_dimension_numbers<[1], [0], [0], [1], [0, 0, 1, 1], [], []>} : vector<32x128xbf16>, vector<128x128xbf16>, vector<32x128xf32> -> vector<32x128xf32>
    %179 = arith.addf %172, %178 : vector<32x128xf32>
    %c0_166 = arith.constant 0 : index
    %c9_167 = arith.constant 9 : index
    %c0_168 = arith.constant 0 : index
    %180 = vector.load %arg28[%c0_166, %c9_167, %c0_168] : memref<2x32x128xf32, #tpu.memory_space<vmem>>, vector<2x16x128xf32>
    %181 = vector.shape_cast %180 : vector<2x16x128xf32> to vector<32x128xf32>
    %182 = arith.truncf %181 : vector<32x128xf32> to vector<32x128xbf16>
    %c2_169 = arith.constant 2 : index
    %c0_170 = arith.constant 0 : index
    %c0_171 = arith.constant 0 : index
    %183 = vector.load %arg19[%c2_169, %c0_170, %c0_171] : memref<3x128x128xbf16, #tpu.memory_space<vmem>>, vector<1x128x128xbf16>
    %184 = vector.shape_cast %183 : vector<1x128x128xbf16> to vector<128x128xbf16>
    %cst_172 = arith.constant dense<0.000000e+00> : vector<32x128xf32>
    %185 = tpu.matmul %182, %184, %cst_172 {dimension_numbers = #tpu.dot_dimension_numbers<[1], [0], [0], [1], [0, 0, 1, 1], [], []>} : vector<32x128xbf16>, vector<128x128xbf16>, vector<32x128xf32> -> vector<32x128xf32>
    %186 = arith.addf %179, %185 : vector<32x128xf32>
    %c0_173 = arith.constant 0 : index
    %c0_174 = arith.constant 0 : index
    %187 = vector.load %arg20[%c0_173, %c0_174] : memref<1x128xf32, #tpu.memory_space<vmem>>, vector<1x128xf32>
    %188 = vector.broadcast %187 : vector<1x128xf32> to vector<32x128xf32>
    %189 = arith.mulf %186, %188 : vector<32x128xf32>
    %c0_175 = arith.constant 0 : index
    %c0_176 = arith.constant 0 : index
    %190 = vector.load %arg21[%c0_175, %c0_176] : memref<1x128xf32, #tpu.memory_space<vmem>>, vector<1x128xf32>
    %191 = vector.broadcast %190 : vector<1x128xf32> to vector<32x128xf32>
    %192 = arith.addf %189, %191 : vector<32x128xf32>
    %cst_177 = arith.constant 0.000000e+00 : f32
    %193 = vector.broadcast %cst_177 : f32 to vector<32x128xf32>
    %194 = arith.maximumf %192, %193 : vector<32x128xf32>
    %195 = vector.shape_cast %194 : vector<32x128xf32> to vector<2x16x128xf32>
    %c0_178 = arith.constant 0 : index
    %c8_179 = arith.constant 8 : index
    %c0_180 = arith.constant 0 : index
    %196 = vector.load %arg29[%c0_178, %c8_179, %c0_180] : memref<2x32x128xf32, #tpu.memory_space<vmem>>, vector<2x16x128xf32>
    tpu.vector_store %arg29[%c0_178, %c8_179, %c0_180], %195 {strides = array<i32>} : memref<2x32x128xf32, #tpu.memory_space<vmem>>, vector<2x16x128xf32>,
    %c0_181 = arith.constant 0 : index
    %c8_182 = arith.constant 8 : index
    %c0_183 = arith.constant 0 : index
    %197 = vector.load %arg28[%c0_181, %c8_182, %c0_183] : memref<2x32x128xf32, #tpu.memory_space<vmem>>, vector<2x16x128xf32>
    %198 = vector.shape_cast %197 : vector<2x16x128xf32> to vector<32x128xf32>
    %cst_184 = arith.constant 0.000000e+00 : f32
    %199 = vector.broadcast %cst_184 : f32 to vector<32x128xf32>
    %c0_185 = arith.constant 0 : index
    %c7_186 = arith.constant 7 : index
    %c0_187 = arith.constant 0 : index
    %200 = vector.load %arg29[%c0_185, %c7_186, %c0_187] : memref<2x32x128xf32, #tpu.memory_space<vmem>>, vector<2x16x128xf32>
    %201 = vector.shape_cast %200 : vector<2x16x128xf32> to vector<32x128xf32>
    %202 = arith.truncf %201 : vector<32x128xf32> to vector<32x128xbf16>
    %c0_188 = arith.constant 0 : index
    %c0_189 = arith.constant 0 : index
    %c0_190 = arith.constant 0 : index
    %203 = vector.load %arg22[%c0_188, %c0_189, %c0_190] : memref<3x128x128xbf16, #tpu.memory_space<vmem>>, vector<1x128x128xbf16>
    %204 = vector.shape_cast %203 : vector<1x128x128xbf16> to vector<128x128xbf16>
    %cst_191 = arith.constant dense<0.000000e+00> : vector<32x128xf32>
    %205 = tpu.matmul %202, %204, %cst_191 {dimension_numbers = #tpu.dot_dimension_numbers<[1], [0], [0], [1], [0, 0, 1, 1], [], []>} : vector<32x128xbf16>, vector<128x128xbf16>, vector<32x128xf32> -> vector<32x128xf32>
    %206 = arith.addf %199, %205 : vector<32x128xf32>
    %c0_192 = arith.constant 0 : index
    %c8_193 = arith.constant 8 : index
    %c0_194 = arith.constant 0 : index
    %207 = vector.load %arg29[%c0_192, %c8_193, %c0_194] : memref<2x32x128xf32, #tpu.memory_space<vmem>>, vector<2x16x128xf32>
    %208 = vector.shape_cast %207 : vector<2x16x128xf32> to vector<32x128xf32>
    %209 = arith.truncf %208 : vector<32x128xf32> to vector<32x128xbf16>
    %c1_195 = arith.constant 1 : index
    %c0_196 = arith.constant 0 : index
    %c0_197 = arith.constant 0 : index
    %210 = vector.load %arg22[%c1_195, %c0_196, %c0_197] : memref<3x128x128xbf16, #tpu.memory_space<vmem>>, vector<1x128x128xbf16>
    %211 = vector.shape_cast %210 : vector<1x128x128xbf16> to vector<128x128xbf16>
    %cst_198 = arith.constant dense<0.000000e+00> : vector<32x128xf32>
    %212 = tpu.matmul %209, %211, %cst_198 {dimension_numbers = #tpu.dot_dimension_numbers<[1], [0], [0], [1], [0, 0, 1, 1], [], []>} : vector<32x128xbf16>, vector<128x128xbf16>, vector<32x128xf32> -> vector<32x128xf32>
    %213 = arith.addf %206, %212 : vector<32x128xf32>
    %c0_199 = arith.constant 0 : index
    %c9_200 = arith.constant 9 : index
    %c0_201 = arith.constant 0 : index
    %214 = vector.load %arg29[%c0_199, %c9_200, %c0_201] : memref<2x32x128xf32, #tpu.memory_space<vmem>>, vector<2x16x128xf32>
    %215 = vector.shape_cast %214 : vector<2x16x128xf32> to vector<32x128xf32>
    %216 = arith.truncf %215 : vector<32x128xf32> to vector<32x128xbf16>
    %c2_202 = arith.constant 2 : index
    %c0_203 = arith.constant 0 : index
    %c0_204 = arith.constant 0 : index
    %217 = vector.load %arg22[%c2_202, %c0_203, %c0_204] : memref<3x128x128xbf16, #tpu.memory_space<vmem>>, vector<1x128x128xbf16>
    %218 = vector.shape_cast %217 : vector<1x128x128xbf16> to vector<128x128xbf16>
    %cst_205 = arith.constant dense<0.000000e+00> : vector<32x128xf32>
    %219 = tpu.matmul %216, %218, %cst_205 {dimension_numbers = #tpu.dot_dimension_numbers<[1], [0], [0], [1], [0, 0, 1, 1], [], []>} : vector<32x128xbf16>, vector<128x128xbf16>, vector<32x128xf32> -> vector<32x128xf32>
    %220 = arith.addf %213, %219 : vector<32x128xf32>
    %c0_206 = arith.constant 0 : index
    %c0_207 = arith.constant 0 : index
    %221 = vector.load %arg23[%c0_206, %c0_207] : memref<1x128xf32, #tpu.memory_space<vmem>>, vector<1x128xf32>
    %222 = vector.broadcast %221 : vector<1x128xf32> to vector<32x128xf32>
    %223 = arith.mulf %220, %222 : vector<32x128xf32>
    %c0_208 = arith.constant 0 : index
    %c0_209 = arith.constant 0 : index
    %224 = vector.load %arg24[%c0_208, %c0_209] : memref<1x128xf32, #tpu.memory_space<vmem>>, vector<1x128xf32>
    %225 = vector.broadcast %224 : vector<1x128xf32> to vector<32x128xf32>
    %226 = arith.addf %223, %225 : vector<32x128xf32>
    %227 = arith.addf %226, %198 : vector<32x128xf32>
    %cst_210 = arith.constant 0.000000e+00 : f32
    %228 = vector.broadcast %cst_210 : f32 to vector<32x128xf32>
    %229 = arith.maximumf %227, %228 : vector<32x128xf32>
    %230 = vector.shape_cast %229 : vector<32x128xf32> to vector<2x16x128xf32>
    %c0_211 = arith.constant 0 : index
    %c8_212 = arith.constant 8 : index
    %c0_213 = arith.constant 0 : index
    %231 = vector.load %arg28[%c0_211, %c8_212, %c0_213] : memref<2x32x128xf32, #tpu.memory_space<vmem>>, vector<2x16x128xf32>
    tpu.vector_store %arg28[%c0_211, %c8_212, %c0_213], %230 {strides = array<i32>} : memref<2x32x128xf32, #tpu.memory_space<vmem>>, vector<2x16x128xf32>,
    %c0_214 = arith.constant 0 : index
    %c8_215 = arith.constant 8 : index
    %c0_216 = arith.constant 0 : index
    %232 = vector.load %arg28[%c0_214, %c8_215, %c0_216] : memref<2x32x128xf32, #tpu.memory_space<vmem>>, vector<2x16x128xf32>
    %cst_217 = arith.constant dense<0.000000e+00> : vector<2x128xf32>
    %233 = vector.multi_reduction <add>, %232, %cst_217 [1] : vector<2x16x128xf32> to vector<2x128xf32>
    %cst_218 = arith.constant 1.600000e+01 : f32
    %234 = vector.broadcast %cst_218 : f32 to vector<2x128xf32>
    %235 = arith.divf %233, %234 : vector<2x128xf32>
    %c0_219 = arith.constant 0 : index
    %c0_220 = arith.constant 0 : index
    %236 = vector.load %arg25[%c0_219, %c0_220] : memref<128x7xf32, #tpu.memory_space<vmem>>, vector<128x7xf32>
    %cst_221 = arith.constant dense<0.000000e+00> : vector<2x7xf32>
    %237 = tpu.matmul %235, %236, %cst_221 {dimension_numbers = #tpu.dot_dimension_numbers<[1], [0], [0], [1], [0, 0, 1, 1], [], []>} : vector<2x128xf32>, vector<128x7xf32>, vector<2x7xf32> -> vector<2x7xf32>
    %c0_222 = arith.constant 0 : index
    %c0_223 = arith.constant 0 : index
    %238 = vector.load %arg26[%c0_222, %c0_223] : memref<1x7xf32, #tpu.memory_space<vmem>>, vector<1x7xf32>
    %239 = vector.broadcast %238 : vector<1x7xf32> to vector<2x7xf32>
    %240 = arith.addf %237, %239 : vector<2x7xf32>
    %c0_224 = arith.constant 0 : index
    %c0_225 = arith.constant 0 : index
    %241 = vector.load %arg27[%c0_224, %c0_225] : memref<2x7xf32, #tpu.memory_space<vmem>>, vector<2x7xf32>
    tpu.vector_store %arg27[%c0_224, %c0_225], %240 {strides = array<i32>} : memref<2x7xf32, #tpu.memory_space<vmem>>, vector<2x7xf32>,
    return
  }
}

</mosaic_0001>

<bundles_post_ra>
// kernel: resnet_forward.1
= control target key start
LH: loop header
LB: loop body
LE: loop exit
PB: predicated region body
PF: predicated region fallthrough
CT: control target
= control target key end

     0   :  { %s5187_s0 = inlined_call_operand.vmem [shape: bf16[2,16,128], index: 0, kind: input, shape index: {}]   ;;  %s5188_s1 = inlined_call_operand.vmem [shape: bf16[3,128,128], index: 1, kind: input, shape index: {}]   ;;  %s5189_s2 = inlined_call_operand.vmem [shape: f32[1,128], index: 2, kind: input, shape index: {}]   ;;  %s5190_s3 = inlined_call_operand.hbm [shape: f32[1,128], index: 3, kind: input, shape index: {}]   ;;  %s5191_s4 = inlined_call_operand.hbm [shape: bf16[3,128,128], index: 4, kind: input, shape index: {}]   ;;  %s5192_s5 = inlined_call_operand.hbm [shape: f32[1,128], index: 5, kind: input, shape index: {}]   ;;  %s5193_s6 = inlined_call_operand.hbm [shape: f32[1,128], index: 6, kind: input, shape index: {}]   ;;  %s5194_s7 = inlined_call_operand.vmem [shape: bf16[1,128,128], index: 7, kind: input, shape index: {}]   ;;  %s5195_s8 = inlined_call_operand.hbm [shape: f32[1,128], index: 8, kind: input, shape index: {}]   ;;  %s5196_s9 = inlined_call_operand.hbm [shape: f32[1,128], index: 9, kind: input, shape index: {}]   ;;  %s5197_s10 = inlined_call_operand.hbm [shape: bf16[3,128,128], index: 10, kind: input, shape index: {}]   ;;  %s5198_s11 = inlined_call_operand.vmem [shape: f32[1,128], index: 11, kind: input, shape index: {}]   ;;  %s5199_s12 = inlined_call_operand.hbm [shape: f32[1,128], index: 12, kind: input, shape index: {}]   ;;  %s5200_s13 = inlined_call_operand.hbm [shape: bf16[3,128,128], index: 13, kind: input, shape index: {}]   ;;  %s5201_s14 = inlined_call_operand.vmem [shape: f32[1,128], index: 14, kind: input, shape index: {}]   ;;  %s5202_s15 = inlined_call_operand.hbm [shape: f32[1,128], index: 15, kind: input, shape index: {}]   ;;  %s5203_s16 = inlined_call_operand.hbm [shape: bf16[1,128,128], index: 16, kind: input, shape index: {}]   ;;  %s5204_s17 = inlined_call_operand.vmem [shape: f32[1,128], index: 17, kind: input, shape index: {}]   ;;  %s5205_s18 = inlined_call_operand.hbm [shape: f32[1,128], index: 18, kind: input, shape index: {}]   ;;  %s5206_s19 = inlined_call_operand.hbm [shape: bf16[3,128,128], index: 19, kind: input, shape index: {}]   ;;  %s5207_s20 = inlined_call_operand.vmem [shape: f32[1,128], index: 20, kind: input, shape index: {}]   ;;  %s5208_s21 = inlined_call_operand.vmem [shape: f32[1,128], index: 21, kind: input, shape index: {}]   ;;  %s5209_s22 = inlined_call_operand.hbm [shape: bf16[3,128,128], index: 22, kind: input, shape index: {}]   ;;  %s5210_s23 = inlined_call_operand.vmem [shape: f32[1,128], index: 23, kind: input, shape index: {}]   ;;  %s5211_s24 = inlined_call_operand.vmem [shape: f32[1,128], index: 24, kind: input, shape index: {}]   ;;  %s5212_s25 = inlined_call_operand.vmem [shape: f32[128,7], index: 25, kind: input, shape index: {}]   ;;  %s5213_s26 = inlined_call_operand.hbm [shape: f32[1,7], index: 26, kind: input, shape index: {}]   ;;  %s5214_s27 = inlined_call_operand.hbm [shape: f32[2,7], index: 27, kind: output, shape index: {}]  }
   0x1   :  { %5226 = sst [smem:[#allocation38_spill]] %s5187_s0 }
   0x2   :  { %5227 = sst [smem:[#allocation39_spill]] %s5188_s1 }
   0x3   :  { %5228 = sst [smem:[#allocation40_spill]] %s5189_s2 }
   0x4   :  { %5229 = sst [smem:[#allocation41_spill]] %s5190_s3 }
   0x5   :  { %5230 = sst [smem:[#allocation42_spill]] %s5191_s4 }
   0x6   :  { %5231 = sst [smem:[#allocation43_spill]] %s5192_s5 }
   0x7   :  { %5232 = sst [smem:[#allocation44_spill]] %s5193_s6 }
   0x8   :  { %5233 = sst [smem:[#allocation45_spill]] %s5194_s7 }
   0x9   :  { %5234 = sst [smem:[#allocation46_spill]] %s5195_s8 }
   0xa   :  { %5235 = sst [smem:[#allocation47_spill]] %s5196_s9 }
   0xb   :  { %5236 = sst [smem:[#allocation48_spill]] %s5197_s10 }
   0xc   :  { %5237 = sst [smem:[#allocation49_spill]] %s5198_s11 }
   0xd   :  { %5238 = sst [smem:[#allocation50_spill]] %s5210_s23 }
   0xe   :  { %5239 = sst [smem:[#allocation51_spill]] %s5211_s24 }
   0xf   :  { %5240 = sst [smem:[#allocation52_spill]] %s5214_s27 }
  0x10   :  { %32 = vsyncpa [#allocation5], 0 }
  0x11   :  { %33 = vsyncpa [#allocation8], 0 }
  0x12   :  { %34 = vsyncpa [#allocation11], 0 }
  0x13   :  { %35 = vsyncpa [#allocation14], 0 }
  0x14   :  { %36 = vsyncpa [#allocation17], 0 }
  0x15   :  { %37 = vsyncpa [#allocation20], 0 }
  0x16   :  { %38 = vsyncpa [#allocation23], 0 }
  0x17   :  { %39 = vsyncpa [#allocation26], 0 }
  0x18   :  { %40 = vsyncpa [#allocation6], 0  ;;  %s4596_s7 = smov [#allocation7]   ;;  %s5241_s9 = sld [smem:[#allocation42_spill]] }
  0x19   :  { %s62_s4 = sshll.u32 %s4596_s7, 4  ;;  %s63_s4 = int_to_ptr.vmem [resolvable:$true] %s62_s4 }
  0x1e   :  { %s4226_s5 = scalar_lea.hbm %s5241_s9, 3072 }
  0x1f   :  { %p4227_p0 = scmp.ne.s32.totalorder %s5241_s9, %s4226_s5  ;;  %p4230_p1 = scmp.lt.u32.totalorder %s4226_s5, %s5241_s9 }
  0x21   :  { %p4232_p2 = pnand %p4230_p1, %p4227_p0 }
  0x23   :  { %4235 = shalt.err (!%p4232_p2)
}
  0x24   :  { %s4236_s1 = scalar_lea.vmem %s63_s4, 3072  ;;  %p4241_p4 = scmp.lt.s32.totalorder %s63_s4, %s63_s4 }
  0x25   :  { %p4237_p3 = scmp.ne.s32.totalorder %s63_s4, %s4236_s1  ;;  %p4242_p5 = scmp.lt.s32.totalorder %s4236_s1, %s4236_s1 }
  0x27   :  { %p4243_p6 = por %p4242_p5, %p4241_p4 }
  0x29   :  { %p4244_p7 = pnand %p4243_p6, %p4237_p3 }
  0x2b   :  { %4247 = shalt.err (!%p4244_p7)
}
  0x2c   :  { %s4597_s6 = smov 64   ;;  %s4598_s11 = smov 4  }
  0x2d   :  { %68 = dma.hbm_to_vmem [thread:$0]  %s5241_s9, 3072, %s63_s4, [#allocation8], %s4597_s6, %s4597_s6, %s4598_s11  }
  0x2e   :  { %s4599_s7 = smov [#allocation10]   ;;  %s4600_s30 = smov [#allocation13]  }
  0x2f   :  { %s85_s8 = sshll.u32 %s4599_s7, 4  ;;  %s107_s5 = sshll.u32 %s4600_s30, 4  ;;  %s86_s8 = int_to_ptr.vmem [resolvable:$true] %s85_s8  ;;  %s108_s5 = int_to_ptr.vmem [resolvable:$true] %s107_s5 }
  0x30   :  { %s5242_s10 = sld [smem:[#allocation44_spill]] }
  0x36   :  { %s4248_s29 = scalar_lea.hbm %s5242_s10, 16 }
  0x37   :  { %p4249_p8 = scmp.ne.s32.totalorder %s5242_s10, %s4248_s29  ;;  %p4252_p9 = scmp.lt.u32.totalorder %s4248_s29, %s5242_s10 }
  0x39   :  { %p4254_p10 = pnand %p4252_p9, %p4249_p8 }
  0x3b   :  { %4257 = shalt.err (!%p4254_p10)
}
  0x3c   :  { %s4258_s4 = scalar_lea.vmem %s86_s8, 16  ;;  %s4262_s9 = scalar_lea.vmem %s86_s8, 32 }
  0x3d   :  { %p4259_p11 = scmp.ne.s32.totalorder %s86_s8, %s4258_s4  ;;  %p4263_p12 = scmp.lt.s32.totalorder %s86_s8, %s86_s8 }
  0x3e   :  { %p4264_p13 = scmp.lt.s32.totalorder %s4262_s9, %s4258_s4 }
  0x40   :  { %p4265_p0 = por %p4264_p13, %p4263_p12 }
  0x42   :  { %p4266_p1 = pnand %p4265_p0, %p4259_p11 }
  0x44   :  { %4269 = shalt.err (!%p4266_p1)
}
  0x45   :  { %88 = dma.hbm_to_vmem [thread:$0]  %s5242_s10, 16, %s86_s8, [#allocation11]  }
  0x46   :  { %s5243_s30 = sld [smem:[#allocation47_spill]] }
  0x4c   :  { %s4270_s23 = scalar_lea.hbm %s5243_s30, 16 }
  0x4d   :  { %p4271_p2 = scmp.ne.s32.totalorder %s5243_s30, %s4270_s23  ;;  %p4274_p3 = scmp.lt.u32.totalorder %s4270_s23, %s5243_s30 }
  0x4f   :  { %p4276_p4 = pnand %p4274_p3, %p4271_p2 }
  0x51   :  { %4279 = shalt.err (!%p4276_p4)
}
  0x52   :  { %s4280_s1 = scalar_lea.vmem %s108_s5, 16  ;;  %s4284_s4 = scalar_lea.vmem %s108_s5, 32 }
  0x53   :  { %p4281_p5 = scmp.ne.s32.totalorder %s108_s5, %s4280_s1  ;;  %p4285_p6 = scmp.lt.s32.totalorder %s108_s5, %s108_s5 }
  0x54   :  { %p4286_p7 = scmp.lt.s32.totalorder %s4284_s4, %s4280_s1 }
  0x56   :  { %p4287_p8 = por %p4286_p7, %p4285_p6 }
  0x58   :  { %p4288_p9 = pnand %p4287_p8, %p4281_p5 }
  0x5a   :  { %4291 = shalt.err (!%p4288_p9)
}
  0x5b   :  { %110 = dma.hbm_to_vmem [thread:$0]  %s5243_s30, 16, %s108_s5, [#allocation14]  }
  0x5c   :  { %s4601_s9 = smov [#allocation16]   ;;  %s4602_s3 = smov [#allocation19]  }
  0x5d   :  { %s131_s2 = sshll.u32 %s4601_s9, 4  ;;  %s155_s27 = sshll.u32 %s4602_s3, 4  ;;  %s132_s2 = int_to_ptr.vmem [resolvable:$true] %s131_s2  ;;  %s156_s27 = int_to_ptr.vmem [resolvable:$true] %s155_s27 }
  0x5e   :  { %s4292_s24 = scalar_lea.hbm %s5199_s12, 16 }
  0x5f   :  { %p4293_p10 = scmp.ne.s32.totalorder %s5199_s12, %s4292_s24  ;;  %p4296_p11 = scmp.lt.u32.totalorder %s4292_s24, %s5199_s12 }
  0x61   :  { %p4298_p12 = pnand %p4296_p11, %p4293_p10 }
  0x63   :  { %4301 = shalt.err (!%p4298_p12)
}
  0x64   :  { %s4302_s5 = scalar_lea.vmem %s132_s2, 16  ;;  %s4306_s30 = scalar_lea.vmem %s132_s2, 32 }
  0x65   :  { %p4303_p13 = scmp.ne.s32.totalorder %s132_s2, %s4302_s5  ;;  %p4307_p0 = scmp.lt.s32.totalorder %s132_s2, %s132_s2 }
  0x66   :  { %p4308_p1 = scmp.lt.s32.totalorder %s4306_s30, %s4302_s5 }
  0x68   :  { %p4309_p2 = por %p4308_p1, %p4307_p0 }
  0x6a   :  { %p4310_p3 = pnand %p4309_p2, %p4303_p13 }
  0x6c   :  { %4313 = shalt.err (!%p4310_p3)
}
  0x6d   :  { %134 = dma.hbm_to_vmem [thread:$0]  %s5199_s12, 16, %s132_s2, [#allocation17]  }
  0x6e   :  { %s4314_s3 = scalar_lea.hbm %s5202_s15, 16 }
  0x6f   :  { %p4315_p4 = scmp.ne.s32.totalorder %s5202_s15, %s4314_s3  ;;  %p4318_p5 = scmp.lt.u32.totalorder %s4314_s3, %s5202_s15 }
  0x71   :  { %p4320_p6 = pnand %p4318_p5, %p4315_p4 }
  0x73   :  { %4323 = shalt.err (!%p4320_p6)
}
  0x74   :  { %s4324_s0 = scalar_lea.vmem %s156_s27, 16  ;;  %s4328_s29 = scalar_lea.vmem %s156_s27, 32 }
  0x75   :  { %p4325_p7 = scmp.ne.s32.totalorder %s156_s27, %s4324_s0  ;;  %p4329_p8 = scmp.lt.s32.totalorder %s156_s27, %s156_s27 }
  0x76   :  { %p4330_p9 = scmp.lt.s32.totalorder %s4328_s29, %s4324_s0 }
  0x78   :  { %p4331_p10 = por %p4330_p9, %p4329_p8 }
  0x7a   :  { %p4332_p11 = pnand %p4331_p10, %p4325_p7 }
  0x7c   :  { %4335 = shalt.err (!%p4332_p11)
}
  0x7d   :  { %158 = dma.hbm_to_vmem [thread:$0]  %s5202_s15, 16, %s156_s27, [#allocation20]  }
  0x7e   :  { %s4603_s1 = smov [#allocation22]   ;;  %s4604_s30 = smov [#allocation25]  }
  0x7f   :  { %s179_s5 = sshll.u32 %s4603_s1, 4  ;;  %s204_s4 = sshll.u32 %s4604_s30, 4  ;;  %s180_s5 = int_to_ptr.vmem [resolvable:$true] %s179_s5  ;;  %s205_s4 = int_to_ptr.vmem [resolvable:$true] %s204_s4 }
  0x80   :  { %s4336_s9 = scalar_lea.hbm %s5205_s18, 16 }
  0x81   :  { %p4337_p12 = scmp.ne.s32.totalorder %s5205_s18, %s4336_s9  ;;  %p4340_p13 = scmp.lt.u32.totalorder %s4336_s9, %s5205_s18 }
  0x83   :  { %p4342_p0 = pnand %p4340_p13, %p4337_p12 }
  0x85   :  { %4345 = shalt.err (!%p4342_p0)
}
  0x86   :  { %s4346_s15 = scalar_lea.vmem %s180_s5, 16  ;;  %s4350_s27 = scalar_lea.vmem %s180_s5, 32 }
  0x87   :  { %p4347_p1 = scmp.ne.s32.totalorder %s180_s5, %s4346_s15  ;;  %p4351_p2 = scmp.lt.s32.totalorder %s180_s5, %s180_s5 }
  0x88   :  { %p4352_p3 = scmp.lt.s32.totalorder %s4350_s27, %s4346_s15 }
  0x8a   :  { %p4353_p4 = por %p4352_p3, %p4351_p2 }
  0x8c   :  { %p4354_p5 = pnand %p4353_p4, %p4347_p1 }
  0x8e   :  { %4357 = shalt.err (!%p4354_p5)
}
  0x8f   :  { %182 = dma.hbm_to_vmem [thread:$0]  %s5205_s18, 16, %s180_s5, [#allocation23]  }
  0x90   :  { %s4358_s2 = scalar_lea.hbm %s5209_s22, 3072 }
  0x91   :  { %p4359_p6 = scmp.ne.s32.totalorder %s5209_s22, %s4358_s2  ;;  %p4362_p7 = scmp.lt.u32.totalorder %s4358_s2, %s5209_s22 }
  0x93   :  { %p4364_p8 = pnand %p4362_p7, %p4359_p6 }
  0x95   :  { %4367 = shalt.err (!%p4364_p8)
}
  0x96   :  { %s4368_s9 = scalar_lea.vmem %s205_s4, 3072  ;;  %p4373_p10 = scmp.lt.s32.totalorder %s205_s4, %s205_s4 }
  0x97   :  { %p4369_p9 = scmp.ne.s32.totalorder %s205_s4, %s4368_s9  ;;  %p4374_p11 = scmp.lt.s32.totalorder %s4368_s9, %s4368_s9 }
  0x99   :  { %p4375_p12 = por %p4374_p11, %p4373_p10 }
  0x9b   :  { %p4376_p13 = pnand %p4375_p12, %p4369_p9 }
  0x9d   :  { %4379 = shalt.err (!%p4376_p13)
}
  0x9e   :  { %210 = dma.hbm_to_vmem [thread:$0]  %s5209_s22, 3072, %s205_s4, [#allocation26], %s4597_s6, %s4597_s6, %s4598_s11  }
  0x9f   :  { %s4605_s3 = smov [#allocation4]   ;;  %s4606_s23 = smov [#allocation9]  }
  0xa0   :  { %s53_s7 = sshll.u32 %s4605_s3, 4  ;;  %s75_s24 = sshll.u32 %s4606_s23, 4  ;;  %s54_s7 = int_to_ptr.vmem [resolvable:$true] %s53_s7  ;;  %s76_s24 = int_to_ptr.vmem [resolvable:$true] %s75_s24 }
  0xa1   :  { %s5244_s28 = sld [smem:[#allocation41_spill]] }
  0xa7   :  { %s4380_s0 = scalar_lea.hbm %s5244_s28, 16 }
  0xa8   :  { %p4381_p0 = scmp.ne.s32.totalorder %s5244_s28, %s4380_s0  ;;  %p4384_p1 = scmp.lt.u32.totalorder %s4380_s0, %s5244_s28 }
  0xaa   :  { %p4386_p2 = pnand %p4384_p1, %p4381_p0 }
  0xac   :  { %4389 = shalt.err (!%p4386_p2)
}
  0xad   :  { %s4390_s22 = scalar_lea.vmem %s54_s7, 16  ;;  %s4394_s4 = scalar_lea.vmem %s54_s7, 32 }
  0xae   :  { %p4391_p3 = scmp.ne.s32.totalorder %s54_s7, %s4390_s22  ;;  %p4395_p4 = scmp.lt.s32.totalorder %s54_s7, %s54_s7 }
  0xaf   :  { %p4396_p5 = scmp.lt.s32.totalorder %s4394_s4, %s4390_s22 }
  0xb1   :  { %p4397_p6 = por %p4396_p5, %p4395_p4 }
  0xb3   :  { %p4398_p7 = pnand %p4397_p6, %p4391_p3 }
  0xb5   :  { %4401 = shalt.err (!%p4398_p7)
}
  0xb6   :  { %56 = dma.hbm_to_vmem [thread:$0]  %s5244_s28, 16, %s54_s7, [#allocation5]  }
  0xb7   :  { %s5245_s18 = sld [smem:[#allocation43_spill]] }
  0xbd   :  { %s4402_s5 = scalar_lea.hbm %s5245_s18, 16 }
  0xbe   :  { %p4403_p8 = scmp.ne.s32.totalorder %s5245_s18, %s4402_s5  ;;  %p4406_p9 = scmp.lt.u32.totalorder %s4402_s5, %s5245_s18 }
  0xc0   :  { %p4408_p10 = pnand %p4406_p9, %p4403_p8 }
  0xc2   :  { %4411 = shalt.err (!%p4408_p10)
}
  0xc3   :  { %s4412_s0 = scalar_lea.vmem %s76_s24, 16  ;;  %s4416_s29 = scalar_lea.vmem %s76_s24, 32 }
  0xc4   :  { %p4413_p11 = scmp.ne.s32.totalorder %s76_s24, %s4412_s0  ;;  %p4417_p12 = scmp.lt.s32.totalorder %s76_s24, %s76_s24 }
  0xc5   :  { %p4418_p13 = scmp.lt.s32.totalorder %s4416_s29, %s4412_s0 }
  0xc7   :  { %p4419_p0 = por %p4418_p13, %p4417_p12 }
  0xc9   :  { %p4420_p1 = pnand %p4419_p0, %p4413_p11 }
  0xcb   :  { %4423 = shalt.err (!%p4420_p1)
}
  0xcc   :  { %78 = dma.hbm_to_vmem [thread:$0]  %s5245_s18, 16, %s76_s24, [#allocation8]  }
  0xcd   :  { %s4607_s12 = smov [#allocation12]   ;;  %s4608_s1 = smov [#allocation15]  }
  0xce   :  { %s97_s2 = sshll.u32 %s4607_s12, 4  ;;  %s116_s22 = sshll.u32 %s4608_s1, 4  ;;  %s98_s2 = int_to_ptr.vmem [resolvable:$true] %s97_s2  ;;  %s117_s22 = int_to_ptr.vmem [resolvable:$true] %s116_s22 }
  0xcf   :  { %s5246_s8 = sld [smem:[#allocation46_spill]] }
  0xd5   :  { %s4424_s10 = scalar_lea.hbm %s5246_s8, 16 }
  0xd6   :  { %p4425_p2 = scmp.ne.s32.totalorder %s5246_s8, %s4424_s10  ;;  %p4428_p3 = scmp.lt.u32.totalorder %s4424_s10, %s5246_s8 }
  0xd8   :  { %p4430_p4 = pnand %p4428_p3, %p4425_p2 }
  0xda   :  { %4433 = shalt.err (!%p4430_p4)
}
  0xdb   :  { %s4434_s24 = scalar_lea.vmem %s98_s2, 16  ;;  %s4438_s18 = scalar_lea.vmem %s98_s2, 32 }
  0xdc   :  { %p4435_p5 = scmp.ne.s32.totalorder %s98_s2, %s4434_s24  ;;  %p4439_p6 = scmp.lt.s32.totalorder %s98_s2, %s98_s2 }
  0xdd   :  { %p4440_p7 = scmp.lt.s32.totalorder %s4438_s18, %s4434_s24 }
  0xdf   :  { %p4441_p8 = por %p4440_p7, %p4439_p6 }
  0xe1   :  { %p4442_p9 = pnand %p4441_p8, %p4435_p5 }
  0xe3   :  { %4445 = shalt.err (!%p4442_p9)
}
  0xe4   :  { %100 = dma.hbm_to_vmem [thread:$0]  %s5246_s8, 16, %s98_s2, [#allocation11]  }
  0xe5   :  { %s5247_s7 = sld [smem:[#allocation48_spill]] }
  0xeb   :  { %s4446_s28 = scalar_lea.hbm %s5247_s7, 3072 }
  0xec   :  { %p4447_p10 = scmp.ne.s32.totalorder %s5247_s7, %s4446_s28  ;;  %p4450_p11 = scmp.lt.u32.totalorder %s4446_s28, %s5247_s7 }
  0xee   :  { %p4452_p12 = pnand %p4450_p11, %p4447_p10 }
  0xf0   :  { %4455 = shalt.err (!%p4452_p12)
}
  0xf1   :  { %s4456_s10 = scalar_lea.vmem %s117_s22, 3072  ;;  %p4461_p0 = scmp.lt.s32.totalorder %s117_s22, %s117_s22 }
  0xf2   :  { %p4457_p13 = scmp.ne.s32.totalorder %s117_s22, %s4456_s10  ;;  %p4462_p1 = scmp.lt.s32.totalorder %s4456_s10, %s4456_s10 }
  0xf4   :  { %p4463_p2 = por %p4462_p1, %p4461_p0 }
  0xf6   :  { %p4464_p3 = pnand %p4463_p2, %p4457_p13 }
  0xf8   :  { %4467 = shalt.err (!%p4464_p3)
}
  0xf9   :  { %122 = dma.hbm_to_vmem [thread:$0]  %s5247_s7, 3072, %s117_s22, [#allocation14], %s4597_s6, %s4597_s6, %s4598_s11  }
  0xfa   :  { %s4609_s9 = smov [#allocation18]   ;;  %s4610_s3 = smov [#allocation21]  }
  0xfb   :  { %s140_s5 = sshll.u32 %s4609_s9, 4  ;;  %s164_s23 = sshll.u32 %s4610_s3, 4  ;;  %s141_s5 = int_to_ptr.vmem [resolvable:$true] %s140_s5  ;;  %s165_s23 = int_to_ptr.vmem [resolvable:$true] %s164_s23 }
  0xfc   :  { %s4468_s15 = scalar_lea.hbm %s5200_s13, 3072 }
  0xfd   :  { %p4469_p4 = scmp.ne.s32.totalorder %s5200_s13, %s4468_s15  ;;  %p4472_p5 = scmp.lt.u32.totalorder %s4468_s15, %s5200_s13 }
  0xff   :  { %p4474_p6 = pnand %p4472_p5, %p4469_p4 }
 0x101   :  { %4477 = shalt.err (!%p4474_p6)
}
 0x102   :  { %s4478_s22 = scalar_lea.vmem %s141_s5, 3072  ;;  %p4483_p8 = scmp.lt.s32.totalorder %s141_s5, %s141_s5 }
 0x103   :  { %p4479_p7 = scmp.ne.s32.totalorder %s141_s5, %s4478_s22  ;;  %p4484_p9 = scmp.lt.s32.totalorder %s4478_s22, %s4478_s22 }
 0x105   :  { %p4485_p10 = por %p4484_p9, %p4483_p8 }
 0x107   :  { %p4486_p11 = pnand %p4485_p10, %p4479_p7 }
 0x109   :  { %4489 = shalt.err (!%p4486_p11)
}
 0x10a   :  { %146 = dma.hbm_to_vmem [thread:$0]  %s5200_s13, 3072, %s141_s5, [#allocation17], %s4597_s6, %s4597_s6, %s4598_s11  }
 0x10b   :  { %s4490_s30 = scalar_lea.hbm %s5203_s16, 1024 }
 0x10c   :  { %p4491_p12 = scmp.ne.s32.totalorder %s5203_s16, %s4490_s30  ;;  %p4494_p13 = scmp.lt.u32.totalorder %s4490_s30, %s5203_s16 }
 0x10e   :  { %p4496_p0 = pnand %p4494_p13, %p4491_p12 }
 0x110   :  { %4499 = shalt.err (!%p4496_p0)
}
 0x111   :  { %s4500_s3 = scalar_lea.vmem %s165_s23, 1024  ;;  %p4505_p2 = scmp.lt.s32.totalorder %s165_s23, %s165_s23 }
 0x112   :  { %p4501_p1 = scmp.ne.s32.totalorder %s165_s23, %s4500_s3  ;;  %p4506_p3 = scmp.lt.s32.totalorder %s4500_s3, %s4500_s3 }
 0x114   :  { %p4507_p4 = por %p4506_p3, %p4505_p2 }
 0x116   :  { %p4508_p5 = pnand %p4507_p4, %p4501_p1 }
 0x118   :  { %4511 = shalt.err (!%p4508_p5)
}
 0x119   :  { %170 = dma.hbm_to_vmem [thread:$0]  %s5203_s16, 1024, %s165_s23, [#allocation20], %s4597_s6, %s4597_s6, %s4598_s11  }
 0x11a   :  { %s4611_s24 = smov [#allocation24]   ;;  %s4612_s15 = smov [#allocation27]  }
 0x11b   :  { %s188_s18 = sshll.u32 %s4611_s24, 4  ;;  %s223_s27 = sshll.u32 %s4612_s15, 4  ;;  %s189_s18 = int_to_ptr.vmem [resolvable:$true] %s188_s18  ;;  %s224_s27 = int_to_ptr.vmem [resolvable:$true] %s223_s27 }
 0x11c   :  { %s4512_s28 = scalar_lea.hbm %s5206_s19, 3072 }
 0x11d   :  { %p4513_p6 = scmp.ne.s32.totalorder %s5206_s19, %s4512_s28  ;;  %p4516_p7 = scmp.lt.u32.totalorder %s4512_s28, %s5206_s19 }
 0x11f   :  { %p4518_p8 = pnand %p4516_p7, %p4513_p6 }
 0x121   :  { %4521 = shalt.err (!%p4518_p8)
}
 0x122   :  { %s4522_s16 = scalar_lea.vmem %s189_s18, 3072  ;;  %p4527_p10 = scmp.lt.s32.totalorder %s189_s18, %s189_s18 }
 0x123   :  { %p4523_p9 = scmp.ne.s32.totalorder %s189_s18, %s4522_s16  ;;  %p4528_p11 = scmp.lt.s32.totalorder %s4522_s16, %s4522_s16 }
 0x125   :  { %p4529_p12 = por %p4528_p11, %p4527_p10 }
 0x127   :  { %p4530_p13 = pnand %p4529_p12, %p4523_p9 }
 0x129   :  { %4533 = shalt.err (!%p4530_p13)
}
 0x12a   :  { %194 = dma.hbm_to_vmem [thread:$0]  %s5206_s19, 3072, %s189_s18, [#allocation23], %s4597_s6, %s4597_s6, %s4598_s11  }
 0x12b   :  { %s4534_s2 = scalar_lea.hbm %s5213_s26, 16 }
 0x12c   :  { %p4535_p0 = scmp.ne.s32.totalorder %s5213_s26, %s4534_s2  ;;  %p4538_p1 = scmp.lt.u32.totalorder %s4534_s2, %s5213_s26 }
 0x12e   :  { %p4540_p2 = pnand %p4538_p1, %p4535_p0 }
 0x130   :  { %4543 = shalt.err (!%p4540_p2)
}
 0x131   :  { %s4544_s5 = scalar_lea.vmem %s224_s27, 16  ;;  %s4548_s24 = scalar_lea.vmem %s224_s27, 32 }
 0x132   :  { %p4545_p3 = scmp.ne.s32.totalorder %s224_s27, %s4544_s5  ;;  %p4549_p4 = scmp.lt.s32.totalorder %s224_s27, %s224_s27 }
 0x133   :  { %p4550_p5 = scmp.lt.s32.totalorder %s4548_s24, %s4544_s5 }
 0x135   :  { %p4551_p6 = por %p4550_p5, %p4549_p4 }
 0x137   :  { %p4552_p7 = pnand %p4551_p6, %p4545_p3 }
 0x139   :  { %4555 = shalt.err (!%p4552_p7)
}
 0x13a   :  { %226 = dma.hbm_to_vmem [thread:$0]  %s5213_s26, 16, %s224_s27, [#allocation26]  }
 0x13b   :  { %4578 = dma.done.wait [#allocation5], 16  }
 0x13c   :  { %4579 = vsyncadd [#allocation5], 4294967280 }
 0x13d   :  { %4580 = dma.done.wait [#allocation8], 3088  }
 0x13e   :  { %4581 = vsyncadd [#allocation8], 4294964208 }
 0x13f   :  { %4582 = dma.done.wait [#allocation11], 32  }
 0x140   :  { %4583 = vsyncadd [#allocation11], 4294967264 }
 0x141   :  { %4584 = dma.done.wait [#allocation14], 3088  }
 0x142   :  { %4585 = vsyncadd [#allocation14], 4294964208 }
 0x143   :  { %4586 = dma.done.wait [#allocation17], 3088  }
 0x144   :  { %4587 = vsyncadd [#allocation17], 4294964208 }
 0x145   :  { %4588 = dma.done.wait [#allocation20], 1040  }
 0x146   :  { %4589 = vsyncadd [#allocation20], 4294966256 }
 0x147   :  { %4590 = dma.done.wait [#allocation23], 3088  }
 0x148   :  { %4591 = vsyncadd [#allocation23], 4294964208 }
 0x149   :  { %4592 = dma.done.wait [#allocation26], 3088  }
 0x14a   :  { %4593 = vsyncadd [#allocation26], 4294964208  ;;  %v4613_v0 = vmov 0.0   ;;  %s5248_s18 = sld [smem:[#allocation39_spill]]  ;;  %s5249_s1 = sld [smem:[#allocation38_spill]]  ;;  %v4089_v20 = vld [vmem:[#allocation7 + $0x40] sm:$0xff]  }
 0x14b   :  { %273 = vst [vmem:[#allocation2] sm:$0xff] %v4613_v0  ;;  %276 = vst [vmem:[#allocation2 + $0x18] sm:$0xff] %v4613_v0  ;;  %v4090_v21 = vld [vmem:[#allocation7 + $0x48] sm:$0xff]   ;;  %3615 = vmatprep.subr.bf16.mxu1 %v4089_v20  ;;  %v4091_v24 = vld [vmem:[#allocation7 + $0x50] sm:$0xff]   ;;  %s5250_s7 = sld [smem:[#allocation45_spill]]  ;;  %s5251_s26 = sld [smem:[#allocation40_spill]] }
 0x14c   :  { %277 = vst [vmem:[#allocation2 + $0x20] sm:$0xff] %v4613_v0  ;;  %280 = vst [vmem:[#allocation2 + $0x38] sm:$0xff] %v4613_v0  ;;  %3616 = vmatpush3.bf16.msra.mxu1 %v4089_v20  ;;  %v4092_v48 = vld [vmem:[#allocation7 + $0x58] sm:$0xff]   ;;  %v4093_v49 = vld [vmem:[#allocation7 + $0x60] sm:$0xff]   ;;  %s5252_s27 = sld [smem:[#allocation49_spill]]  ;;  %vm4615_vm0 = vmmov 0  }
 0x14d   :  { %281 = vst [vmem:[#allocation3] sm:$0xff] %v4613_v0  ;;  %284 = vst [vmem:[#allocation3 + $0x18] sm:$0xff] %v4613_v0  ;;  %3617 = vmatprep.subr.bf16.mxu1 %v4090_v21  ;;  %v4094_v50 = vld [vmem:[#allocation7 + $0x68] sm:$0xff]   ;;  %v4095_v51 = vld [vmem:[#allocation7 + $0x70] sm:$0xff]   ;;  %s5253_s16 = sld [smem:[#allocation50_spill]]  ;;  %s5254_s30 = sld [smem:[#allocation51_spill]] }
 0x14e   :  { %285 = vst [vmem:[#allocation3 + $0x20] sm:$0xff] %v4613_v0  ;;  %288 = vst [vmem:[#allocation3 + $0x38] sm:$0xff] %v4613_v0  ;;  %v4096_v52 = vld [vmem:[#allocation7 + $0x78] sm:$0xff]   ;;  %v4097_v53 = vld [vmem:[#allocation7] sm:$0xff]   ;;  %vm3003_vm1 = vcmask 1041409   ;;  %vm3076_vm2 = vcmask 50176  }
 0x14f   :  { %v4121_v62 = vld [vmem:[#allocation15 + $0x40] sm:$0xff]   ;;  %v4123_v63 = vld [vmem:[#allocation15 + $0x48] sm:$0xff]  }
 0x150   :  { %v4063_v1 = vld [vmem:[%s5248_s18 + $0x40] sm:$0xff]   ;;  %v4064_v2 = vld [vmem:[%s5248_s18 + $0x48] sm:$0xff]   ;;  %v4065_v3 = vld [vmem:[%s5248_s18 + $0x50] sm:$0xff]   ;;  %3618 = vmatpush3.bf16.msra.mxu1 %v4090_v21 }
 0x151   :  { %3535 = vmatprep.subr.bf16.mxu0 %v4063_v1  ;;  %v4066_v4 = vld [vmem:[%s5248_s18 + $0x58] sm:$0xff]   ;;  %v3310_v5 = vld [vmem:[%s5249_s1] sm:$0xff]   ;;  %v3317_v9 = vld [vmem:[%s5249_s1 + $0x8] sm:$0xff]   ;;  %3619 = vmatprep.subr.bf16.mxu1 %v4091_v24 }
 0x152   :  { %3536 = vmatpush3.bf16.msra.mxu0 %v4063_v1  ;;  %v4973_v6 = vld [vmem:[%s5249_s1] sm:$0xff]  ;;  %v3311_v7 = vunpack.c.l.bf16 %v3310_v5  ;;  %v3312_v8 = vunpack.c.h.bf16 %v3310_v5  ;;  %v3315_v10 = vunpack.c.l.bf16 %v3317_v9  ;;  %v3316_v11 = vunpack.c.h.bf16 %v3317_v9  ;;  %v4068_v13 = vld [vmem:[%s5248_s18 + $0x68] sm:$0xff]   ;;  %v4069_v14 = vld [vmem:[%s5248_s18 + $0x70] sm:$0xff]  }
 0x153   :  { %3537 = vmatprep.subr.bf16.mxu0 %v4064_v2  ;;  %3551 = vmatprep.mubr.bf16.mxu0 %v4973_v6  ;;  %v4067_v12 = vld [vmem:[%s5248_s18 + $0x60] sm:$0xff]   ;;  %v4070_v15 = vld [vmem:[%s5248_s18 + $0x78] sm:$0xff]   ;;  %v4997_v19 = vld [vmem:[%s5249_s1 + $0x8] sm:$0xff] }
 0x154   :  { %297 = vst [vmem:[#allocation2 + $0x8] sm:$0xff] %v3311_v7  ;;  %298 = vst [vmem:[#allocation2 + $0x10] sm:$0xff] %v3312_v8  ;;  %v4072_v16 = vld [vmem:[%s5248_s18] sm:$0xff]   ;;  %v4074_v22 = vld [vmem:[%s5248_s18 + $0x8] sm:$0xff]   ;;  %3620 = vmatpush3.bf16.msra.mxu1 %v4091_v24 }
 0x155   :  { %299 = vst [vmem:[#allocation2 + $0x28] sm:$0xff] %v3315_v10  ;;  %300 = vst [vmem:[#allocation2 + $0x30] sm:$0xff] %v3316_v11  ;;  %v4075_v25 = vld [vmem:[%s5248_s18 + $0x10] sm:$0xff]   ;;  %v4076_v26 = vld [vmem:[%s5248_s18 + $0x18] sm:$0xff]   ;;  %3621 = vmatprep.subr.bf16.mxu1 %v4092_v48 }
 0x156   :  { %3538 = vmatpush3.bf16.msra.mxu0 %v4064_v2  ;;  %v4077_v27 = vld [vmem:[%s5248_s18 + $0x20] sm:$0xff]   ;;  %v4078_v28 = vld [vmem:[%s5248_s18 + $0x28] sm:$0xff]   ;;  %v4079_v29 = vld [vmem:[%s5248_s18 + $0x30] sm:$0xff]  }
 0x157   :  { %3539 = vmatprep.subr.bf16.mxu0 %v4065_v3  ;;  %v4080_v30 = vld [vmem:[%s5248_s18 + $0x38] sm:$0xff]   ;;  %v4081_v33 = vld [vmem:[%s5248_s18 + $0x80] sm:$0xff]   ;;  %v4082_v37 = vld [vmem:[%s5248_s18 + $0x88] sm:$0xff]  }
 0x158   :  { %v4083_v39 = vld [vmem:[%s5248_s18 + $0x90] sm:$0xff]   ;;  %v4084_v40 = vld [vmem:[%s5248_s18 + $0x98] sm:$0xff]   ;;  %v4085_v41 = vld [vmem:[%s5248_s18 + $0xa0] sm:$0xff]   ;;  %3622 = vmatpush3.bf16.msra.mxu1 %v4092_v48 }
 0x159   :  { %v4086_v42 = vld [vmem:[%s5248_s18 + $0xa8] sm:$0xff]   ;;  %v4087_v43 = vld [vmem:[%s5248_s18 + $0xb0] sm:$0xff]   ;;  %v4088_v44 = vld [vmem:[%s5248_s18 + $0xb8] sm:$0xff]   ;;  %3623 = vmatprep.subr.bf16.mxu1 %v4093_v49 }
 0x15a   :  { %3540 = vmatpush3.bf16.msra.mxu0 %v4065_v3  ;;  %v4105_v54 = vld [vmem:[%s5250_s7] sm:$0xff]   ;;  %v4107_v55 = vld [vmem:[%s5250_s7 + $0x8] sm:$0xff]   ;;  %v4109_v56 = vld [vmem:[%s5250_s7 + $0x10] sm:$0xff]  }
 0x15b   :  { %3541 = vmatprep.subr.bf16.mxu0 %v4066_v4  ;;  %v301_v17 = vld [vmem:[#allocation2 + $0x7] sm:$0xff]  ;;  %v302_v18 = vld [vmem:[#allocation2 + $0xf] sm:$0xff]  ;;  %v4111_v57 = vld [vmem:[%s5250_s7 + $0x18] sm:$0xff]  }
 0x15c   :  { %v305_v23 = vpack.c.bf16 %v302_v18, %v301_v17  ;;  %v303_v31 = vld [vmem:[#allocation2 + $0x27] sm:$0xff]  ;;  %v304_v32 = vld [vmem:[#allocation2 + $0x2f] sm:$0xff]  ;;  %3624 = vmatpush3.bf16.msra.mxu1 %v4093_v49  ;;  %v4119_v61 = vld [vmem:[%s5250_s7 + $0x38] sm:$0xff]  }
 0x15d   :  { %v540_v34 = vld [vmem:[#allocation2 + $0x9] sm:$0xff]  ;;  %v541_v35 = vld [vmem:[#allocation2 + $0x11] sm:$0xff]  ;;  %v306_v36 = vpack.c.bf16 %v304_v32, %v303_v31  ;;  %3625 = vmatprep.subr.bf16.mxu1 %v4094_v50  ;;  %v4113_v58 = vld [vmem:[%s5250_s7 + $0x20] sm:$0xff]  }
 0x15e   :  { %3542 = vmatpush3.bf16.msra.mxu0 %v4066_v4  ;;  %v544_v38 = vpack.c.bf16 %v541_v35, %v540_v34  ;;  %v542_v45 = vld [vmem:[#allocation2 + $0x29] sm:$0xff]  ;;  %v543_v46 = vld [vmem:[#allocation2 + $0x31] sm:$0xff]  ;;  %v3156_v0 = vld [vmem:[%s5251_s26] ss:$0 sm:$0xff] }
 0x15f   :  { %3543 = vmatprep.subr.bf16.mxu0 %v4067_v12  ;;  %v545_v47 = vpack.c.bf16 %v543_v46, %v542_v45  ;;  %v4115_v59 = vld [vmem:[%s5250_s7 + $0x28] sm:$0xff]   ;;  %v4117_v60 = vld [vmem:[%s5250_s7 + $0x30] sm:$0xff]   ;;  %v3157_v2 = vld [vmem:[#allocation4] ss:$0 sm:$0xff] }
 0x160   :  { %3626 = vmatpush3.bf16.msra.mxu1 %v4094_v50  ;;  %v4098_v20 = vld [vmem:[#allocation7 + $0x8] sm:$0xff]   ;;  %v4099_v21 = vld [vmem:[#allocation7 + $0x10] sm:$0xff]   ;;  %v4106_v31 = vld [vmem:[#allocation7 + $0x80] sm:$0xff]  }
 0x161   :  { %3627 = vmatprep.subr.bf16.mxu1 %v4095_v51  ;;  %v4122_v45 = vld [vmem:[#allocation21] sm:$0xff]   ;;  %v4124_v49 = vld [vmem:[#allocation21 + $0x8] sm:$0xff]   ;;  %v4126_v50 = vld [vmem:[#allocation21 + $0x10] sm:$0xff]  }
 0x162   :  { %3544 = vmatpush3.bf16.msra.mxu0 %v4067_v12 }
 0x163   :  { %3545 = vmatprep.subr.bf16.mxu0 %v4068_v13 }
 0x164   :  { %3628 = vmatpush3.bf16.msra.mxu1 %v4095_v51  ;;  %v4127_v51 = vld [vmem:[#allocation15 + $0x58] sm:$0xff]  }
 0x165   :  { %3629 = vmatprep.subr.bf16.mxu1 %v4096_v52 }
 0x166   :  { %3546 = vmatpush3.bf16.msra.mxu0 %v4068_v13 }
 0x167   :  { %3547 = vmatprep.subr.bf16.mxu0 %v4069_v14 }
 0x168   :  { %3630 = vmatpush3.bf16.msra.mxu1 %v4096_v52  ;;  %v4128_v52 = vld [vmem:[#allocation21 + $0x18] sm:$0xff]  }
 0x169   :  { %3635 = vmatprep.subr.bf16.mxu1 %v4097_v53 }
 0x16a   :  { %3548 = vmatpush3.bf16.msra.mxu0 %v4069_v14 }
 0x16b   :  { %3549 = vmatprep.subr.bf16.mxu0 %v4070_v15 }
 0x16e   :  { %3550 = vmatpush3.bf16.msra.mxu0 %v4070_v15 }
 0x16f   :  { %3555 = vmatprep.subr.bf16.mxu0 %v4072_v16 }
 0x171   :  { %3552 = vmatmul.mubr.bf16.vlgmr.msra.gmra.mrb[0].mxu0 %v4997_v19 }
 0x172   :  { %3556 = vmatpush3.bf16.msra.mxu0 %v4072_v16  ;;  %3571 = vmatprep.mubr.bf16.mxu0 %v305_v23 }
 0x173   :  { %3557 = vmatprep.subr.bf16.mxu0 %v4074_v22 }
 0x176   :  { %3558 = vmatpush3.bf16.msra.mxu0 %v4074_v22 }
 0x177   :  { %3559 = vmatprep.subr.bf16.mxu0 %v4075_v25 }
 0x17a   :  { %3560 = vmatpush3.bf16.msra.mxu0 %v4075_v25  ;;  %v4100_v25 = vld [vmem:[#allocation7 + $0x18] sm:$0xff]  }
 0x17b   :  { %3561 = vmatprep.subr.bf16.mxu0 %v4076_v26 }
 0x17e   :  { %3562 = vmatpush3.bf16.msra.mxu0 %v4076_v26  ;;  %v4101_v26 = vld [vmem:[#allocation7 + $0x20] sm:$0xff]  }
 0x17f   :  { %3563 = vmatprep.subr.bf16.mxu0 %v4077_v27 }
 0x182   :  { %3564 = vmatpush3.bf16.msra.mxu0 %v4077_v27  ;;  %v4102_v27 = vld [vmem:[#allocation7 + $0x28] sm:$0xff]  }
 0x183   :  { %3565 = vmatprep.subr.bf16.mxu0 %v4078_v28 }
 0x186   :  { %3566 = vmatpush3.bf16.msra.mxu0 %v4078_v28  ;;  %v4103_v28 = vld [vmem:[#allocation7 + $0x30] sm:$0xff]  }
 0x187   :  { %3567 = vmatprep.subr.bf16.mxu0 %v4079_v29 }
 0x18a   :  { %3568 = vmatpush3.bf16.msra.mxu0 %v4079_v29  ;;  %v4125_v29 = vld [vmem:[#allocation15 + $0x50] sm:$0xff]  }
 0x18b   :  { %3569 = vmatprep.subr.bf16.mxu0 %v4080_v30 }
 0x18e   :  { %3570 = vmatpush3.bf16.msra.mxu0 %v4080_v30  ;;  %v4104_v30 = vld [vmem:[#allocation7 + $0x38] sm:$0xff]  }
 0x18f   :  { %3575 = vmatprep.subr.bf16.mxu0 %v4081_v33 }
 0x191   :  { %3572 = vmatmul.mubr.bf16.vlgmr.msra.gmra.mrb[0].mxu0 %v306_v36 }
 0x192   :  { %3576 = vmatpush3.bf16.msra.mxu0 %v4081_v33  ;;  %3591 = vmatprep.mubr.bf16.mxu0 %v544_v38 }
 0x193   :  { %3577 = vmatprep.subr.bf16.mxu0 %v4082_v37 }
 0x196   :  { %3578 = vmatpush3.bf16.msra.mxu0 %v4082_v37  ;;  %v4108_v37 = vld [vmem:[#allocation7 + $0x88] sm:$0xff]  }
 0x197   :  { %3579 = vmatprep.subr.bf16.mxu0 %v4083_v39 }
 0x19a   :  { %3580 = vmatpush3.bf16.msra.mxu0 %v4083_v39  ;;  %v4110_v39 = vld [vmem:[#allocation7 + $0x90] sm:$0xff]  }
 0x19b   :  { %3581 = vmatprep.subr.bf16.mxu0 %v4084_v40 }
 0x19e   :  { %3582 = vmatpush3.bf16.msra.mxu0 %v4084_v40  ;;  %v4112_v40 = vld [vmem:[#allocation7 + $0x98] sm:$0xff]  }
 0x19f   :  { %3583 = vmatprep.subr.bf16.mxu0 %v4085_v41 }
 0x1a2   :  { %3584 = vmatpush3.bf16.msra.mxu0 %v4085_v41  ;;  %v4114_v41 = vld [vmem:[#allocation7 + $0xa0] sm:$0xff]  }
 0x1a3   :  { %3585 = vmatprep.subr.bf16.mxu0 %v4086_v42 }
 0x1a6   :  { %3586 = vmatpush3.bf16.msra.mxu0 %v4086_v42  ;;  %v4116_v42 = vld [vmem:[#allocation7 + $0xa8] sm:$0xff]  }
 0x1a7   :  { %3587 = vmatprep.subr.bf16.mxu0 %v4087_v43 }
 0x1aa   :  { %3588 = vmatpush3.bf16.msra.mxu0 %v4087_v43  ;;  %v4118_v43 = vld [vmem:[#allocation7 + $0xb0] sm:$0xff]  }
 0x1ab   :  { %3589 = vmatprep.subr.bf16.mxu0 %v4088_v44 }
 0x1ae   :  { %3590 = vmatpush3.bf16.msra.mxu0 %v4088_v44  ;;  %v4120_v44 = vld [vmem:[#allocation7 + $0xb8] sm:$0xff]  }
 0x1af   :  { %3595 = vmatprep.subr.bf16.mxu0 %v4105_v54 }
 0x1b1   :  { %3592 = vmatmul.mubr.bf16.vlgmr.msra.gmra.mrb[0].mxu0 %v545_v47 }
 0x1b2   :  { %3611 = vmatprep.mubr.bf16.mxu0 %v4973_v6  ;;  %3596 = vmatpush3.bf16.msra.mxu0 %v4105_v54 }
 0x1b3   :  { %3597 = vmatprep.subr.bf16.mxu0 %v4107_v55 }
 0x1b6   :  { %3598 = vmatpush3.bf16.msra.mxu0 %v4107_v55  ;;  %v4130_v55 = vld [vmem:[#allocation21 + $0x20] sm:$0xff]  }
 0x1b7   :  { %3599 = vmatprep.subr.bf16.mxu0 %v4109_v56 }
 0x1ba   :  { %3600 = vmatpush3.bf16.msra.mxu0 %v4109_v56 }
 0x1bb   :  { %3601 = vmatprep.subr.bf16.mxu0 %v4111_v57 }
 0x1be   :  { %3602 = vmatpush3.bf16.msra.mxu0 %v4111_v57 }
 0x1bf   :  { %3603 = vmatprep.subr.bf16.mxu0 %v4113_v58 }
 0x1c2   :  { %3604 = vmatpush3.bf16.msra.mxu0 %v4113_v58 }
 0x1c3   :  { %3605 = vmatprep.subr.bf16.mxu0 %v4115_v59 }
 0x1c6   :  { %3606 = vmatpush3.bf16.msra.mxu0 %v4115_v59  ;;  %v4131_v59 = vld [vmem:[#allocation15 + $0x68] sm:$0xff]  }
 0x1c7   :  { %3607 = vmatprep.subr.bf16.mxu0 %v4117_v60 }
 0x1ca   :  { %3608 = vmatpush3.bf16.msra.mxu0 %v4117_v60  ;;  %v4132_v60 = vld [vmem:[#allocation21 + $0x28] sm:$0xff]  }
 0x1cb   :  { %3609 = vmatprep.subr.bf16.mxu0 %v4119_v61 }
 0x1ce   :  { %3610 = vmatpush3.bf16.msra.mxu0 %v4119_v61  ;;  %v4133_v61 = vld [vmem:[#allocation15 + $0x70] sm:$0xff]  }
 0x1cf   :  { %3675 = vmatprep.subr.bf16.mxu0 %v4121_v62 }
 0x1d1   :  { %3612 = vmatmul.mubr.bf16.vlgmr.msra.gmra.mrb[4].mxu0 %v4997_v19 }
 0x1d2   :  { %3676 = vmatpush3.bf16.msra.mxu0 %v4121_v62  ;;  %v4134_v62 = vld [vmem:[#allocation21 + $0x30] sm:$0xff]  }
 0x1d3   :  { %3677 = vmatprep.subr.bf16.mxu0 %v4123_v63 }
 0x1d6   :  { %3678 = vmatpush3.bf16.msra.mxu0 %v4123_v63  ;;  %v4135_v63 = vld [vmem:[#allocation15 + $0x78] sm:$0xff]  }
 0x1d7   :  { %3679 = vmatprep.subr.bf16.mxu0 %v4125_v29 }
 0x1da   :  { %3680 = vmatpush3.bf16.msra.mxu0 %v4125_v29 }
 0x1db   :  { %3681 = vmatprep.subr.bf16.mxu0 %v4127_v51 }
 0x1de   :  { %3682 = vmatpush3.bf16.msra.mxu0 %v4127_v51 }
 0x284   :  { %v3593_v1 = vpop.f32.mrb[0].mxu0 }
 0x285   :  { %v673_v3 = vmul.f32 %v3593_v1, %v3156_v0  ;;  %v645_v4 = vpop.f32.mrb[1].mxu0  ;;  %v4137_v1 = vld [vmem:[#allocation15] sm:$0xff]  }
 0x286   :  { %v671_v5 = vmul.f32 %v3156_v0, %v645_v4  ;;  %v3594_v6 = vpop.f32.mrb[2].mxu0  ;;  %v3167_v4 = vld [vmem:[#allocation13] ss:$0 sm:$0xff] }
 0x287   :  { %v684_v7 = vadd.f32 %v3157_v2, %v673_v3  ;;  %v674_v8 = vmul.f32 %v3594_v6, %v3156_v0  ;;  %v648_v9 = vpop.f32.mrb[3].mxu0  ;;  %v3192_v6 = vld [vmem:[#allocation9] ss:$0 sm:$0xff] }
 0x288   :  { %v682_v10 = vadd.f32 %v3157_v2, %v671_v5  ;;  %v672_v11 = vmul.f32 %v3156_v0, %v648_v9  ;;  %v4136_v0 = vld [vmem:[#allocation21 + $0x38] sm:$0xff]  }
 0x289   :  { %v688_v12 = vmax.f32 %v684_v7, 0.0  ;;  %v685_v13 = vadd.f32 %v3157_v2, %v674_v8  ;;  %v3193_v8 = vld [vmem:[#allocation10] ss:$0 sm:$0xff] }
 0x28a   :  { %v686_v14 = vmax.f32 %v682_v10, 0.0  ;;  %v683_v15 = vadd.f32 %v3157_v2, %v672_v11  ;;  %v3166_v2 = vld [vmem:[#allocation12] ss:$0 sm:$0xff] }
 0x28b   :  { %692 = vst [vmem:[#allocation3 + $0x28] sm:$0xff] %v688_v12  ;;  %v689_v16 = vmax.f32 %v685_v13, 0.0 }
 0x28c   :  { %690 = vst [vmem:[#allocation3 + $0x8] sm:$0xff] %v686_v14  ;;  %v687_v17 = vmax.f32 %v683_v15, 0.0 }
 0x28d   :  { %693 = vst [vmem:[#allocation3 + $0x30] sm:$0xff] %v689_v16  ;;  %v862_v18 = vpack.c.bf16 %v689_v16, %v688_v12 }
 0x28e   :  { %691 = vst [vmem:[#allocation3 + $0x10] sm:$0xff] %v687_v17  ;;  %v861_v19 = vpack.c.bf16 %v687_v17, %v686_v14 }
 0x290   :  { %3631 = vmatprep.mubr.bf16.mxu1 %v861_v19 }
 0x291   :  { %3632 = vmatmul.mubr.bf16.vlgmr.msra.gmra.mrb[0].mxu1 %v862_v18 }
 0x292   :  { %3636 = vmatpush3.bf16.msra.mxu1 %v4097_v53  ;;  %v837_v35 = vld [vmem:[#allocation3 + $0x27] sm:$0xff] }
 0x293   :  { %3637 = vmatprep.subr.bf16.mxu1 %v4098_v20  ;;  %v835_v22 = vld [vmem:[#allocation3 + $0x7] sm:$0xff] }
 0x294   :  { %v838_v32 = vld [vmem:[#allocation3 + $0x2f] sm:$0xff] }
 0x295   :  { %v836_v23 = vld [vmem:[#allocation3 + $0xf] sm:$0xff]  ;;  %v840_v36 = vpack.c.bf16 %v838_v32, %v837_v35 }
 0x296   :  { %v839_v24 = vpack.c.bf16 %v836_v23, %v835_v22  ;;  %3638 = vmatpush3.bf16.msra.mxu1 %v4098_v20  ;;  %v1074_v33 = vld [vmem:[#allocation3 + $0x9] sm:$0xff]  ;;  %v1075_v34 = vld [vmem:[#allocation3 + $0x11] sm:$0xff] }
 0x297   :  { %3639 = vmatprep.subr.bf16.mxu1 %v4099_v21  ;;  %v1078_v38 = vpack.c.bf16 %v1075_v34, %v1074_v33  ;;  %v1076_v46 = vld [vmem:[#allocation3 + $0x29] sm:$0xff]  ;;  %v1077_v47 = vld [vmem:[#allocation3 + $0x31] sm:$0xff] }
 0x298   :  { %3651 = vmatprep.mubr.bf16.mxu1 %v839_v24  ;;  %v1079_v48 = vpack.c.bf16 %v1077_v47, %v1076_v46  ;;  %v4129_v53 = vld [vmem:[#allocation15 + $0x60] sm:$0xff]  }
 0x299   :  { %3683 = vmatprep.subr.bf16.mxu0 %v4129_v53  ;;  %v4145_v46 = vld [vmem:[#allocation15 + $0x80] sm:$0xff]  }
 0x29a   :  { %3640 = vmatpush3.bf16.msra.mxu1 %v4099_v21  ;;  %3684 = vmatpush3.bf16.msra.mxu0 %v4129_v53 }
 0x29b   :  { %3641 = vmatprep.subr.bf16.mxu1 %v4100_v25  ;;  %3685 = vmatprep.subr.bf16.mxu0 %v4131_v59 }
 0x29e   :  { %3642 = vmatpush3.bf16.msra.mxu1 %v4100_v25  ;;  %3686 = vmatpush3.bf16.msra.mxu0 %v4131_v59  ;;  %v4152_v59 = vld [vmem:[#allocation15 + $0xb8] sm:$0xff]  }
 0x29f   :  { %3643 = vmatprep.subr.bf16.mxu1 %v4101_v26  ;;  %3687 = vmatprep.subr.bf16.mxu0 %v4133_v61 }
 0x2a2   :  { %3644 = vmatpush3.bf16.msra.mxu1 %v4101_v26  ;;  %3688 = vmatpush3.bf16.msra.mxu0 %v4133_v61 }
 0x2a3   :  { %3645 = vmatprep.subr.bf16.mxu1 %v4102_v27  ;;  %3689 = vmatprep.subr.bf16.mxu0 %v4135_v63 }
 0x2a4   :  { %v3613_v54 = vpop.f32.mrb[4].mxu0 }
 0x2a5   :  { %v798_v56 = vpop.f32.mrb[5].mxu0  ;;  %v822_v3 = vmul.f32 %v3613_v54, %v3166_v2  ;;  %v4147_v54 = vld [vmem:[#allocation15 + $0x90] sm:$0xff]  }
 0x2a6   :  { %3646 = vmatpush3.bf16.msra.mxu1 %v4102_v27  ;;  %v3614_v57 = vpop.f32.mrb[6].mxu0  ;;  %3690 = vmatpush3.bf16.msra.mxu0 %v4135_v63  ;;  %v820_v5 = vmul.f32 %v3166_v2, %v798_v56  ;;  %v4149_v56 = vld [vmem:[#allocation15 + $0xa0] sm:$0xff]  }
 0x2a7   :  { %3647 = vmatprep.subr.bf16.mxu1 %v4103_v28  ;;  %v801_v58 = vpop.f32.mrb[7].mxu0  ;;  %3695 = vmatprep.subr.bf16.mxu0 %v4137_v1  ;;  %v833_v9 = vadd.f32 %v3167_v4, %v822_v3  ;;  %v823_v10 = vmul.f32 %v3614_v57, %v3166_v2  ;;  %v4150_v57 = vld [vmem:[#allocation15 + $0xa8] sm:$0xff]  }
 0x2a8   :  { %v831_v13 = vadd.f32 %v3167_v4, %v820_v5  ;;  %v821_v14 = vmul.f32 %v3166_v2, %v801_v58  ;;  %v4151_v58 = vld [vmem:[#allocation15 + $0xb0] sm:$0xff]   ;;  %v4153_v63 = vld [vmem:[#allocation18 + $0x40] sm:$0xff]   ;;  %v4156_v2 = vld [vmem:[#allocation18 + $0x58] sm:$0xff]  }
 0x2a9   :  { %v834_v22 = vadd.f32 %v3167_v4, %v823_v10  ;;  %v4157_v3 = vld [vmem:[#allocation18 + $0x60] sm:$0xff]   ;;  %v4159_v5 = vld [vmem:[#allocation18 + $0x70] sm:$0xff]  }
 0x2aa   :  { %3648 = vmatpush3.bf16.msra.mxu1 %v4103_v28  ;;  %v832_v25 = vadd.f32 %v3167_v4, %v821_v14  ;;  %v4158_v4 = vld [vmem:[#allocation18 + $0x68] sm:$0xff]   ;;  %v4179_v14 = vld [vmem:[#allocation24 + $0x50] sm:$0xff]  }
 0x2ab   :  { %3649 = vmatprep.subr.bf16.mxu1 %v4104_v30 }
 0x2ae   :  { %3650 = vmatpush3.bf16.msra.mxu1 %v4104_v30 }
 0x2af   :  { %3655 = vmatprep.subr.bf16.mxu1 %v4106_v31 }
 0x2b1   :  { %3652 = vmatmul.mubr.bf16.vlgmr.msra.gmra.mrb[0].mxu1 %v840_v36  ;;  %v4138_v36 = vld [vmem:[#allocation15 + $0x8] sm:$0xff]  }
 0x2b2   :  { %3656 = vmatpush3.bf16.msra.mxu1 %v4106_v31  ;;  %3671 = vmatprep.mubr.bf16.mxu1 %v1078_v38 }
 0x2b3   :  { %3657 = vmatprep.subr.bf16.mxu1 %v4108_v37 }
 0x2b6   :  { %3658 = vmatpush3.bf16.msra.mxu1 %v4108_v37  ;;  %v4139_v37 = vld [vmem:[#allocation15 + $0x10] sm:$0xff]  }
 0x2b7   :  { %3659 = vmatprep.subr.bf16.mxu1 %v4110_v39 }
 0x2ba   :  { %3660 = vmatpush3.bf16.msra.mxu1 %v4110_v39 }
 0x2bb   :  { %3661 = vmatprep.subr.bf16.mxu1 %v4112_v40 }
 0x2be   :  { %3662 = vmatpush3.bf16.msra.mxu1 %v4112_v40 }
 0x2bf   :  { %3663 = vmatprep.subr.bf16.mxu1 %v4114_v41 }
 0x2c2   :  { %3664 = vmatpush3.bf16.msra.mxu1 %v4114_v41  ;;  %v4140_v41 = vld [vmem:[#allocation15 + $0x18] sm:$0xff]  }
 0x2c3   :  { %3665 = vmatprep.subr.bf16.mxu1 %v4116_v42 }
 0x2c6   :  { %3666 = vmatpush3.bf16.msra.mxu1 %v4116_v42  ;;  %v4141_v42 = vld [vmem:[#allocation15 + $0x20] sm:$0xff]  }
 0x2c7   :  { %3667 = vmatprep.subr.bf16.mxu1 %v4118_v43 }
 0x2ca   :  { %3668 = vmatpush3.bf16.msra.mxu1 %v4118_v43  ;;  %v4142_v43 = vld [vmem:[#allocation15 + $0x28] sm:$0xff]  }
 0x2cb   :  { %3669 = vmatprep.subr.bf16.mxu1 %v4120_v44 }
 0x2ce   :  { %3670 = vmatpush3.bf16.msra.mxu1 %v4120_v44  ;;  %v4143_v44 = vld [vmem:[#allocation15 + $0x30] sm:$0xff]  }
 0x2cf   :  { %3735 = vmatprep.subr.bf16.mxu1 %v4122_v45 }
 0x2d1   :  { %3672 = vmatmul.mubr.bf16.vlgmr.msra.gmra.mrb[0].mxu1 %v1079_v48 }
 0x2d2   :  { %3736 = vmatpush3.bf16.msra.mxu1 %v4122_v45  ;;  %v4144_v45 = vld [vmem:[#allocation15 + $0x38] sm:$0xff]  }
 0x2d3   :  { %3737 = vmatprep.subr.bf16.mxu1 %v4124_v49 }
 0x2d6   :  { %3738 = vmatpush3.bf16.msra.mxu1 %v4124_v49 }
 0x2d7   :  { %3739 = vmatprep.subr.bf16.mxu1 %v4126_v50 }
 0x2da   :  { %3740 = vmatpush3.bf16.msra.mxu1 %v4126_v50 }
 0x2db   :  { %3741 = vmatprep.subr.bf16.mxu1 %v4128_v52 }
 0x2de   :  { %3742 = vmatpush3.bf16.msra.mxu1 %v4128_v52  ;;  %v4146_v52 = vld [vmem:[#allocation15 + $0x88] sm:$0xff]  }
 0x2df   :  { %3743 = vmatprep.subr.bf16.mxu1 %v4130_v55 }
 0x2e2   :  { %3744 = vmatpush3.bf16.msra.mxu1 %v4130_v55  ;;  %v4148_v55 = vld [vmem:[#allocation15 + $0x98] sm:$0xff]  }
 0x2e3   :  { %3745 = vmatprep.subr.bf16.mxu1 %v4132_v60 }
 0x2e6   :  { %3746 = vmatpush3.bf16.msra.mxu1 %v4132_v60 }
 0x2e7   :  { %3747 = vmatprep.subr.bf16.mxu1 %v4134_v62 }
 0x2ea   :  { %3748 = vmatpush3.bf16.msra.mxu1 %v4134_v62 }
 0x2eb   :  { %3749 = vmatprep.subr.bf16.mxu1 %v4136_v0 }
 0x2ee   :  { %3750 = vmatpush3.bf16.msra.mxu1 %v4136_v0  ;;  %v4154_v0 = vld [vmem:[#allocation18 + $0x48] sm:$0xff]  }
 0x2ef   :  { %3755 = vmatprep.subr.bf16.mxu1 %v4153_v63 }
 0x3a4   :  { %v3673_v7 = vpop.f32.mrb[0].mxu1 }
 0x3a5   :  { %v1207_v11 = vmul.f32 %v3673_v7, %v3192_v6  ;;  %v1179_v12 = vpop.f32.mrb[1].mxu1  ;;  %v4161_v7 = vld [vmem:[#allocation18] sm:$0xff]  }
 0x3a6   :  { %v1205_v15 = vmul.f32 %v3192_v6, %v1179_v12  ;;  %v3674_v16 = vpop.f32.mrb[2].mxu1  ;;  %v4177_v12 = vld [vmem:[#allocation24 + $0x40] sm:$0xff]  }
 0x3a7   :  { %v1218_v17 = vadd.f32 %v3193_v8, %v1207_v11  ;;  %v1208_v18 = vmul.f32 %v3674_v16, %v3192_v6  ;;  %v1182_v19 = vpop.f32.mrb[3].mxu1 }
 0x3a8   :  { %v1216_v20 = vadd.f32 %v3193_v8, %v1205_v15  ;;  %v1206_v21 = vmul.f32 %v3192_v6, %v1182_v19  ;;  %v4160_v6 = vld [vmem:[#allocation18 + $0x78] sm:$0xff]   ;;  %v3218_v15 = vld [vmem:[%s5252_s27] ss:$0 sm:$0xff] }
 0x3a9   :  { %v1222_v23 = vadd.f32 %v1218_v17, %v833_v9  ;;  %v1219_v24 = vadd.f32 %v3193_v8, %v1208_v18  ;;  %v3219_v17 = vld [vmem:[#allocation16] ss:$0 sm:$0xff] }
 0x3aa   :  { %v1220_v26 = vadd.f32 %v1216_v20, %v831_v13  ;;  %v1217_v27 = vadd.f32 %v3193_v8, %v1206_v21  ;;  %v4178_v13 = vld [vmem:[#allocation24 + $0x48] sm:$0xff]  }
 0x3ab   :  { %v1226_v28 = vmax.f32 %v1222_v23, 0.0  ;;  %v1223_v29 = vadd.f32 %v1219_v24, %v834_v22 }
 0x3ac   :  { %v1224_v30 = vmax.f32 %v1220_v26, 0.0  ;;  %v1221_v31 = vadd.f32 %v1217_v27, %v832_v25 }
 0x3ad   :  { %1230 = vst [vmem:[#allocation2 + $0x28] sm:$0xff] %v1226_v28  ;;  %v1227_v32 = vmax.f32 %v1223_v29, 0.0 }
 0x3ae   :  { %1228 = vst [vmem:[#allocation2 + $0x8] sm:$0xff] %v1224_v30  ;;  %v1225_v33 = vmax.f32 %v1221_v31, 0.0 }
 0x3af   :  { %1231 = vst [vmem:[#allocation2 + $0x30] sm:$0xff] %v1227_v32  ;;  %v1259_v34 = vpack.c.bf16 %v1227_v32, %v1226_v28 }
 0x3b0   :  { %1229 = vst [vmem:[#allocation2 + $0x10] sm:$0xff] %v1225_v33  ;;  %v1258_v35 = vpack.c.bf16 %v1225_v33, %v1224_v30 }
 0x3b2   :  { %3691 = vmatprep.mubr.bf16.mxu0 %v1258_v35  ;;  %3751 = vmatprep.mubr.bf16.mxu1 %v1258_v35  ;;  %v4162_v35 = vld [vmem:[#allocation18 + $0x8] sm:$0xff]  }
 0x3b3   :  { %3692 = vmatmul.mubr.bf16.vlgmr.msra.gmra.mrb[8].mxu0 %v1259_v34  ;;  %3752 = vmatmul.mubr.bf16.vlgmr.msra.gmra.mrb[4].mxu1 %v1259_v34 }
 0x3b4   :  { %3696 = vmatpush3.bf16.msra.mxu0 %v4137_v1  ;;  %v1234_v50 = vld [vmem:[#allocation2 + $0x27] sm:$0xff]  ;;  %3756 = vmatpush3.bf16.msra.mxu1 %v4153_v63  ;;  %v4155_v1 = vld [vmem:[#allocation18 + $0x50] sm:$0xff]   ;;  %v4181_v63 = vld [vmem:[#allocation24 + $0x60] sm:$0xff]  }
 0x3b5   :  { %3697 = vmatprep.subr.bf16.mxu0 %v4138_v36  ;;  %v1232_v38 = vld [vmem:[#allocation2 + $0x7] sm:$0xff]  ;;  %3757 = vmatprep.subr.bf16.mxu1 %v4154_v0 }
 0x3b6   :  { %v1235_v47 = vld [vmem:[#allocation2 + $0x2f] sm:$0xff] }
 0x3b7   :  { %v1233_v39 = vld [vmem:[#allocation2 + $0xf] sm:$0xff]  ;;  %v1237_v51 = vpack.c.bf16 %v1235_v47, %v1234_v50 }
 0x3b8   :  { %v1236_v40 = vpack.c.bf16 %v1233_v39, %v1232_v38  ;;  %3698 = vmatpush3.bf16.msra.mxu0 %v4138_v36  ;;  %v1471_v48 = vld [vmem:[#allocation2 + $0x9] sm:$0xff]  ;;  %v1472_v49 = vld [vmem:[#allocation2 + $0x11] sm:$0xff]  ;;  %3758 = vmatpush3.bf16.msra.mxu1 %v4154_v0  ;;  %v4163_v36 = vld [vmem:[#allocation18 + $0x10] sm:$0xff]  }
 0x3b9   :  { %3699 = vmatprep.subr.bf16.mxu0 %v4139_v37  ;;  %v1475_v53 = vpack.c.bf16 %v1472_v49, %v1471_v48  ;;  %v1473_v60 = vld [vmem:[#allocation2 + $0x29] sm:$0xff]  ;;  %v1474_v61 = vld [vmem:[#allocation2 + $0x31] sm:$0xff]  ;;  %3759 = vmatprep.subr.bf16.mxu1 %v4155_v1 }
 0x3ba   :  { %3711 = vmatprep.mubr.bf16.mxu0 %v1236_v40  ;;  %v1476_v62 = vpack.c.bf16 %v1474_v61, %v1473_v60  ;;  %v4164_v40 = vld [vmem:[#allocation18 + $0x18] sm:$0xff]   ;;  %v4182_v0 = vld [vmem:[#allocation24 + $0x68] sm:$0xff]  }
 0x3bc   :  { %3700 = vmatpush3.bf16.msra.mxu0 %v4139_v37  ;;  %3760 = vmatpush3.bf16.msra.mxu1 %v4155_v1  ;;  %v4183_v1 = vld [vmem:[#allocation24 + $0x70] sm:$0xff]  }
 0x3bd   :  { %3701 = vmatprep.subr.bf16.mxu0 %v4140_v41  ;;  %3761 = vmatprep.subr.bf16.mxu1 %v4156_v2 }
 0x3c0   :  { %3702 = vmatpush3.bf16.msra.mxu0 %v4140_v41  ;;  %3762 = vmatpush3.bf16.msra.mxu1 %v4156_v2  ;;  %v4165_v41 = vld [vmem:[#allocation18 + $0x20] sm:$0xff]  }
 0x3c1   :  { %3703 = vmatprep.subr.bf16.mxu0 %v4141_v42  ;;  %3763 = vmatprep.subr.bf16.mxu1 %v4157_v3  ;;  %v4184_v2 = vld [vmem:[#allocation24 + $0x78] sm:$0xff]  }
 0x3c4   :  { %3704 = vmatpush3.bf16.msra.mxu0 %v4141_v42  ;;  %3764 = vmatpush3.bf16.msra.mxu1 %v4157_v3  ;;  %v4166_v42 = vld [vmem:[#allocation18 + $0x28] sm:$0xff]  }
 0x3c5   :  { %3705 = vmatprep.subr.bf16.mxu0 %v4142_v43  ;;  %3765 = vmatprep.subr.bf16.mxu1 %v4158_v4  ;;  %v4185_v3 = vld [vmem:[#allocation24] sm:$0xff]  }
 0x3c8   :  { %3706 = vmatpush3.bf16.msra.mxu0 %v4142_v43  ;;  %3766 = vmatpush3.bf16.msra.mxu1 %v4158_v4  ;;  %v4167_v43 = vld [vmem:[#allocation18 + $0x30] sm:$0xff]   ;;  %v4201_v4 = vld [vmem:[#allocation25 + $0x40] sm:$0xff]  }
 0x3c9   :  { %3707 = vmatprep.subr.bf16.mxu0 %v4143_v44  ;;  %3767 = vmatprep.subr.bf16.mxu1 %v4159_v5 }
 0x3cc   :  { %3708 = vmatpush3.bf16.msra.mxu0 %v4143_v44  ;;  %3768 = vmatpush3.bf16.msra.mxu1 %v4159_v5  ;;  %v4168_v44 = vld [vmem:[#allocation18 + $0x38] sm:$0xff]   ;;  %v4202_v5 = vld [vmem:[#allocation25 + $0x48] sm:$0xff]  }
 0x3cd   :  { %3709 = vmatprep.subr.bf16.mxu0 %v4144_v45  ;;  %3769 = vmatprep.subr.bf16.mxu1 %v4160_v6 }
 0x3d0   :  { %3710 = vmatpush3.bf16.msra.mxu0 %v4144_v45  ;;  %3770 = vmatpush3.bf16.msra.mxu1 %v4160_v6  ;;  %v4169_v45 = vld [vmem:[#allocation18 + $0x80] sm:$0xff]   ;;  %v4203_v6 = vld [vmem:[#allocation25 + $0x50] sm:$0xff]  }
 0x3d1   :  { %3715 = vmatprep.subr.bf16.mxu0 %v4145_v46  ;;  %3775 = vmatprep.subr.bf16.mxu1 %v4161_v7 }
 0x3d3   :  { %3712 = vmatmul.mubr.bf16.vlgmr.msra.gmra.mrb[8].mxu0 %v1237_v51  ;;  %v4170_v51 = vld [vmem:[#allocation18 + $0x88] sm:$0xff]  }
 0x3d4   :  { %3716 = vmatpush3.bf16.msra.mxu0 %v4145_v46  ;;  %3731 = vmatprep.mubr.bf16.mxu0 %v1475_v53  ;;  %v4171_v53 = vld [vmem:[#allocation18 + $0x90] sm:$0xff]  }
 0x3d5   :  { %3717 = vmatprep.subr.bf16.mxu0 %v4146_v52 }
 0x3d8   :  { %3718 = vmatpush3.bf16.msra.mxu0 %v4146_v52 }
 0x3d9   :  { %3719 = vmatprep.subr.bf16.mxu0 %v4147_v54 }
 0x3dc   :  { %3720 = vmatpush3.bf16.msra.mxu0 %v4147_v54  ;;  %v4172_v54 = vld [vmem:[#allocation18 + $0x98] sm:$0xff]  }
 0x3dd   :  { %3721 = vmatprep.subr.bf16.mxu0 %v4148_v55 }
 0x3e0   :  { %3722 = vmatpush3.bf16.msra.mxu0 %v4148_v55  ;;  %v4173_v55 = vld [vmem:[#allocation18 + $0xa0] sm:$0xff]  }
 0x3e1   :  { %3723 = vmatprep.subr.bf16.mxu0 %v4149_v56 }
 0x3e4   :  { %3724 = vmatpush3.bf16.msra.mxu0 %v4149_v56  ;;  %v4174_v56 = vld [vmem:[#allocation18 + $0xa8] sm:$0xff]  }
 0x3e5   :  { %3725 = vmatprep.subr.bf16.mxu0 %v4150_v57 }
 0x3e8   :  { %3726 = vmatpush3.bf16.msra.mxu0 %v4150_v57  ;;  %v4175_v57 = vld [vmem:[#allocation18 + $0xb0] sm:$0xff]  }
 0x3e9   :  { %3727 = vmatprep.subr.bf16.mxu0 %v4151_v58 }
 0x3ec   :  { %3728 = vmatpush3.bf16.msra.mxu0 %v4151_v58  ;;  %v4176_v58 = vld [vmem:[#allocation18 + $0xb8] sm:$0xff]  }
 0x3ed   :  { %3729 = vmatprep.subr.bf16.mxu0 %v4152_v59 }
 0x3f0   :  { %3730 = vmatpush3.bf16.msra.mxu0 %v4152_v59 }
 0x3f1   :  { %3815 = vmatprep.subr.bf16.mxu0 %v4177_v12 }
 0x3f3   :  { %3732 = vmatmul.mubr.bf16.vlgmr.msra.gmra.mrb[8].mxu0 %v1476_v62  ;;  %v4180_v62 = vld [vmem:[#allocation24 + $0x58] sm:$0xff]  }
 0x3f4   :  { %3816 = vmatpush3.bf16.msra.mxu0 %v4177_v12  ;;  %v3254_v12 = vld [vmem:[%s5201_s14] ss:$0 sm:$0xff] }
 0x3f5   :  { %3817 = vmatprep.subr.bf16.mxu0 %v4178_v13 }
 0x3f8   :  { %3818 = vmatpush3.bf16.msra.mxu0 %v4178_v13 }
 0x3f9   :  { %3819 = vmatprep.subr.bf16.mxu0 %v4179_v14 }
 0x3fc   :  { %3820 = vmatpush3.bf16.msra.mxu0 %v4179_v14  ;;  %v3229_v14 = vld [vmem:[#allocation22] ss:$0 sm:$0xff] }
 0x3fd   :  { %3821 = vmatprep.subr.bf16.mxu0 %v4180_v62 }
 0x400   :  { %3822 = vmatpush3.bf16.msra.mxu0 %v4180_v62  ;;  %v4198_v62 = vld [vmem:[#allocation24 + $0xa8] sm:$0xff]  }
 0x401   :  { %3823 = vmatprep.subr.bf16.mxu0 %v4181_v63 }
 0x404   :  { %3824 = vmatpush3.bf16.msra.mxu0 %v4181_v63  ;;  %v4199_v63 = vld [vmem:[#allocation24 + $0xb0] sm:$0xff]  }
 0x405   :  { %3825 = vmatprep.subr.bf16.mxu0 %v4182_v0 }
 0x408   :  { %3826 = vmatpush3.bf16.msra.mxu0 %v4182_v0  ;;  %v4200_v0 = vld [vmem:[#allocation24 + $0xb8] sm:$0xff]  }
 0x409   :  { %3827 = vmatprep.subr.bf16.mxu0 %v4183_v1 }
 0x40c   :  { %3828 = vmatpush3.bf16.msra.mxu0 %v4183_v1 }
 0x40d   :  { %3829 = vmatprep.subr.bf16.mxu0 %v4184_v2 }
 0x410   :  { %3830 = vmatpush3.bf16.msra.mxu0 %v4184_v2 }
 0x411   :  { %3835 = vmatprep.subr.bf16.mxu0 %v4185_v3 }
 0x486   :  { %v5074_v8 = vpop.f32.mrb[4].mxu1 }
 0x487   :  { %v5076_v9 = vpop.f32.mrb[5].mxu1 }
 0x488   :  { %v5078_v10 = vpop.f32.mrb[6].mxu1 }
 0x489   :  { %v5080_v11 = vpop.f32.mrb[7].mxu1 }
 0x4c6   :  { %v3733_v16 = vpop.f32.mrb[8].mxu0 }
 0x4c7   :  { %v1604_v18 = vmul.f32 %v3733_v16, %v3218_v15  ;;  %v1576_v19 = vpop.f32.mrb[9].mxu0 }
 0x4c8   :  { %v1602_v20 = vmul.f32 %v3218_v15, %v1576_v19  ;;  %v3734_v21 = vpop.f32.mrb[10].mxu0 }
 0x4c9   :  { %v1615_v22 = vadd.f32 %v3219_v17, %v1604_v18  ;;  %v1605_v23 = vmul.f32 %v3734_v21, %v3218_v15  ;;  %v1579_v24 = vpop.f32.mrb[11].mxu0 }
 0x4ca   :  { %v1613_v25 = vadd.f32 %v3219_v17, %v1602_v20  ;;  %v1603_v26 = vmul.f32 %v3218_v15, %v1579_v24 }
 0x4cb   :  { %v1619_v27 = vmax.f32 %v1615_v22, 0.0  ;;  %v1616_v28 = vadd.f32 %v3219_v17, %v1605_v23 }
 0x4cc   :  { %v1617_v29 = vmax.f32 %v1613_v25, 0.0  ;;  %v1614_v30 = vadd.f32 %v3219_v17, %v1603_v26  ;;  %v3255_v17 = vld [vmem:[#allocation19] ss:$0 sm:$0xff] }
 0x4cd   :  { %1623 = vst [vmem:[#allocation3 + $0x28] sm:$0xff] %v1619_v27  ;;  %v1620_v31 = vmax.f32 %v1616_v28, 0.0 }
 0x4ce   :  { %1621 = vst [vmem:[#allocation3 + $0x8] sm:$0xff] %v1617_v29  ;;  %v1618_v32 = vmax.f32 %v1614_v30, 0.0 }
 0x4cf   :  { %1624 = vst [vmem:[#allocation3 + $0x30] sm:$0xff] %v1620_v31  ;;  %v1793_v33 = vpack.c.bf16 %v1620_v31, %v1619_v27 }
 0x4d0   :  { %1622 = vst [vmem:[#allocation3 + $0x10] sm:$0xff] %v1618_v32  ;;  %v1792_v34 = vpack.c.bf16 %v1618_v32, %v1617_v29 }
 0x4d2   :  { %3771 = vmatprep.mubr.bf16.mxu1 %v1792_v34 }
 0x4d3   :  { %3772 = vmatmul.mubr.bf16.vlgmr.msra.gmra.mrb[8].mxu1 %v1793_v33 }
 0x4d4   :  { %3776 = vmatpush3.bf16.msra.mxu1 %v4161_v7  ;;  %v1768_v49 = vld [vmem:[#allocation3 + $0x27] sm:$0xff]  ;;  %v3228_v7 = vld [vmem:[%s5204_s17] ss:$0 sm:$0xff] }
 0x4d5   :  { %3777 = vmatprep.subr.bf16.mxu1 %v4162_v35  ;;  %v1766_v37 = vld [vmem:[#allocation3 + $0x7] sm:$0xff]  ;;  %v1753_v13 = vmul.f32 %v5074_v8, %v3228_v7  ;;  %v1751_v15 = vmul.f32 %v3228_v7, %v5076_v9  ;;  %v1754_v18 = vmul.f32 %v5078_v10, %v3228_v7  ;;  %v1752_v21 = vmul.f32 %v3228_v7, %v5080_v11 }
 0x4d6   :  { %v1769_v46 = vld [vmem:[#allocation3 + $0x2f] sm:$0xff]  ;;  %v4207_v7 = vld [vmem:[#allocation25 + $0x70] sm:$0xff]  }
 0x4d7   :  { %v1767_v38 = vld [vmem:[#allocation3 + $0xf] sm:$0xff]  ;;  %v1771_v50 = vpack.c.bf16 %v1769_v46, %v1768_v49  ;;  %v1764_v24 = vadd.f32 %v3229_v14, %v1753_v13  ;;  %v1762_v28 = vadd.f32 %v3229_v14, %v1751_v15  ;;  %v1765_v30 = vadd.f32 %v3229_v14, %v1754_v18  ;;  %v4191_v49 = vld [vmem:[#allocation24 + $0x30] sm:$0xff]  }
 0x4d8   :  { %v1770_v39 = vpack.c.bf16 %v1767_v38, %v1766_v37  ;;  %3778 = vmatpush3.bf16.msra.mxu1 %v4162_v35  ;;  %v2005_v47 = vld [vmem:[#allocation3 + $0x9] sm:$0xff]  ;;  %v2006_v48 = vld [vmem:[#allocation3 + $0x11] sm:$0xff]  ;;  %v1763_v32 = vadd.f32 %v3229_v14, %v1752_v21  ;;  %v3280_v14 = vld [vmem:[%s5207_s20] ss:$0 sm:$0xff] }
 0x4d9   :  { %3779 = vmatprep.subr.bf16.mxu1 %v4163_v36  ;;  %v2009_v52 = vpack.c.bf16 %v2006_v48, %v2005_v47  ;;  %v2007_v59 = vld [vmem:[#allocation3 + $0x29] sm:$0xff]  ;;  %v2008_v60 = vld [vmem:[#allocation3 + $0x31] sm:$0xff] }
 0x4da   :  { %3791 = vmatprep.mubr.bf16.mxu1 %v1770_v39  ;;  %v2010_v61 = vpack.c.bf16 %v2008_v60, %v2007_v59  ;;  %v4188_v46 = vld [vmem:[#allocation24 + $0x18] sm:$0xff]   ;;  %v4189_v47 = vld [vmem:[#allocation24 + $0x20] sm:$0xff]   ;;  %v4190_v48 = vld [vmem:[#allocation24 + $0x28] sm:$0xff]  }
 0x4db   :  { %v4195_v59 = vld [vmem:[#allocation24 + $0x90] sm:$0xff]   ;;  %v4196_v60 = vld [vmem:[#allocation24 + $0x98] sm:$0xff]   ;;  %v4209_v13 = vld [vmem:[#allocation25] sm:$0xff]  }
 0x4dc   :  { %3780 = vmatpush3.bf16.msra.mxu1 %v4163_v36 }
 0x4dd   :  { %3781 = vmatprep.subr.bf16.mxu1 %v4164_v40 }
 0x4e0   :  { %3782 = vmatpush3.bf16.msra.mxu1 %v4164_v40 }
 0x4e1   :  { %3783 = vmatprep.subr.bf16.mxu1 %v4165_v41 }
 0x4e4   :  { %3784 = vmatpush3.bf16.msra.mxu1 %v4165_v41  ;;  %v4186_v41 = vld [vmem:[#allocation24 + $0x8] sm:$0xff]  }
 0x4e5   :  { %3785 = vmatprep.subr.bf16.mxu1 %v4166_v42 }
 0x4e8   :  { %3786 = vmatpush3.bf16.msra.mxu1 %v4166_v42  ;;  %v4187_v42 = vld [vmem:[#allocation24 + $0x10] sm:$0xff]  }
 0x4e9   :  { %3787 = vmatprep.subr.bf16.mxu1 %v4167_v43 }
 0x4ec   :  { %3788 = vmatpush3.bf16.msra.mxu1 %v4167_v43 }
 0x4ed   :  { %3789 = vmatprep.subr.bf16.mxu1 %v4168_v44 }
 0x4f0   :  { %3790 = vmatpush3.bf16.msra.mxu1 %v4168_v44 }
 0x4f1   :  { %3795 = vmatprep.subr.bf16.mxu1 %v4169_v45 }
 0x4f3   :  { %3792 = vmatmul.mubr.bf16.vlgmr.msra.gmra.mrb[8].mxu1 %v1771_v50  ;;  %v4192_v50 = vld [vmem:[#allocation24 + $0x38] sm:$0xff]  }
 0x4f4   :  { %3796 = vmatpush3.bf16.msra.mxu1 %v4169_v45  ;;  %3811 = vmatprep.mubr.bf16.mxu1 %v2009_v52 }
 0x4f5   :  { %3797 = vmatprep.subr.bf16.mxu1 %v4170_v51 }
 0x4f8   :  { %3798 = vmatpush3.bf16.msra.mxu1 %v4170_v51  ;;  %v4193_v51 = vld [vmem:[#allocation24 + $0x80] sm:$0xff]  }
 0x4f9   :  { %3799 = vmatprep.subr.bf16.mxu1 %v4171_v53 }
 0x4fc   :  { %3800 = vmatpush3.bf16.msra.mxu1 %v4171_v53 }
 0x4fd   :  { %3801 = vmatprep.subr.bf16.mxu1 %v4172_v54 }
 0x500   :  { %3802 = vmatpush3.bf16.msra.mxu1 %v4172_v54 }
 0x501   :  { %3803 = vmatprep.subr.bf16.mxu1 %v4173_v55 }
 0x504   :  { %3804 = vmatpush3.bf16.msra.mxu1 %v4173_v55 }
 0x505   :  { %3805 = vmatprep.subr.bf16.mxu1 %v4174_v56 }
 0x508   :  { %3806 = vmatpush3.bf16.msra.mxu1 %v4174_v56 }
 0x509   :  { %3807 = vmatprep.subr.bf16.mxu1 %v4175_v57 }
 0x50c   :  { %3808 = vmatpush3.bf16.msra.mxu1 %v4175_v57  ;;  %v4194_v57 = vld [vmem:[#allocation24 + $0x88] sm:$0xff]  }
 0x50d   :  { %3809 = vmatprep.subr.bf16.mxu1 %v4176_v58 }
 0x510   :  { %3810 = vmatpush3.bf16.msra.mxu1 %v4176_v58 }
 0x511   :  { %3875 = vmatprep.subr.bf16.mxu1 %v4201_v4 }
 0x513   :  { %3812 = vmatmul.mubr.bf16.vlgmr.msra.gmra.mrb[8].mxu1 %v2010_v61  ;;  %v4197_v61 = vld [vmem:[#allocation24 + $0xa0] sm:$0xff]  }
 0x514   :  { %3876 = vmatpush3.bf16.msra.mxu1 %v4201_v4  ;;  %v4204_v4 = vld [vmem:[#allocation25 + $0x58] sm:$0xff]  }
 0x515   :  { %3877 = vmatprep.subr.bf16.mxu1 %v4202_v5 }
 0x518   :  { %3878 = vmatpush3.bf16.msra.mxu1 %v4202_v5  ;;  %v4205_v5 = vld [vmem:[#allocation25 + $0x60] sm:$0xff]  }
 0x519   :  { %3879 = vmatprep.subr.bf16.mxu1 %v4203_v6 }
 0x51c   :  { %3880 = vmatpush3.bf16.msra.mxu1 %v4203_v6  ;;  %v4206_v6 = vld [vmem:[#allocation25 + $0x68] sm:$0xff]  }
 0x51d   :  { %3881 = vmatprep.subr.bf16.mxu1 %v4204_v4 }
 0x520   :  { %3882 = vmatpush3.bf16.msra.mxu1 %v4204_v4  ;;  %v2982_v4 = vld [vmem:[%s5212_s25 + $0x20] sm:$0xff] }
 0x521   :  { %3883 = vmatprep.subr.bf16.mxu1 %v4205_v5 }
 0x524   :  { %3884 = vmatpush3.bf16.msra.mxu1 %v4205_v5  ;;  %v2983_v5 = vld [vmem:[%s5212_s25 + $0x28] sm:$0xff] }
 0x525   :  { %3885 = vmatprep.subr.bf16.mxu1 %v4206_v6 }
 0x528   :  { %3886 = vmatpush3.bf16.msra.mxu1 %v4206_v6  ;;  %v3977_v6 = vpack.c.bf16 %v2983_v5, %v2982_v4 }
 0x529   :  { %3887 = vmatprep.subr.bf16.mxu1 %v4207_v7 }
 0x52c   :  { %3888 = vmatpush3.bf16.msra.mxu1 %v4207_v7  ;;  %v2984_v7 = vld [vmem:[%s5212_s25 + $0x30] sm:$0xff] }
 0x5e6   :  { %v3813_v16 = vpop.f32.mrb[8].mxu1 }
 0x5e7   :  { %v2138_v19 = vmul.f32 %v3813_v16, %v3254_v12  ;;  %v2110_v20 = vpop.f32.mrb[9].mxu1  ;;  %v3281_v16 = vld [vmem:[%s5208_s21] ss:$0 sm:$0xff] }
 0x5e8   :  { %v2136_v22 = vmul.f32 %v3254_v12, %v2110_v20  ;;  %v3814_v23 = vpop.f32.mrb[10].mxu1 }
 0x5e9   :  { %v2149_v25 = vadd.f32 %v3255_v17, %v2138_v19  ;;  %v2139_v26 = vmul.f32 %v3814_v23, %v3254_v12  ;;  %v2113_v27 = vpop.f32.mrb[11].mxu1 }
 0x5ea   :  { %v2147_v29 = vadd.f32 %v3255_v17, %v2136_v22  ;;  %v2137_v8 = vmul.f32 %v3254_v12, %v2113_v27  ;;  %v4208_v12 = vld [vmem:[#allocation25 + $0x78] sm:$0xff]  }
 0x5eb   :  { %v2153_v31 = vadd.f32 %v2149_v25, %v1764_v24  ;;  %v2150_v9 = vadd.f32 %v3255_v17, %v2139_v26  ;;  %3889 = vmatprep.subr.bf16.mxu1 %v4208_v12 }
 0x5ec   :  { %v2151_v33 = vadd.f32 %v2147_v29, %v1762_v28  ;;  %v2148_v34 = vadd.f32 %v3255_v17, %v2137_v8  ;;  %3890 = vmatpush3.bf16.msra.mxu1 %v4208_v12  ;;  %v2985_v12 = vld [vmem:[%s5212_s25 + $0x38] sm:$0xff] }
 0x5ed   :  { %v5095_v10 = vmax.f32 %v2153_v31, 0.0  ;;  %v2154_v35 = vadd.f32 %v2150_v9, %v1765_v30  ;;  %3895 = vmatprep.subr.bf16.mxu1 %v4209_v13 }
 0x5ee   :  { %v5097_v36 = vmax.f32 %v2151_v33, 0.0  ;;  %v2152_v11 = vadd.f32 %v2148_v34, %v1763_v32  ;;  %v4210_v32 = vld [vmem:[#allocation25 + $0x8] sm:$0xff]   ;;  %v4211_v33 = vld [vmem:[#allocation25 + $0x10] sm:$0xff]  }
 0x5ef   :  { %2161 = vst [vmem:[#allocation2 + $0x28] sm:$0xff] %v5095_v10  ;;  %v5100_v37 = vmax.f32 %v2154_v35, 0.0 }
 0x5f0   :  { %2159 = vst [vmem:[#allocation2 + $0x8] sm:$0xff] %v5097_v36  ;;  %v5103_v38 = vmax.f32 %v2152_v11, 0.0 }
 0x5f1   :  { %2162 = vst [vmem:[#allocation2 + $0x30] sm:$0xff] %v5100_v37  ;;  %v2190_v40 = vpack.c.bf16 %v5100_v37, %v5095_v10 }
 0x5f2   :  { %2160 = vst [vmem:[#allocation2 + $0x10] sm:$0xff] %v5103_v38  ;;  %v2189_v39 = vpack.c.bf16 %v5103_v38, %v5097_v36 }
 0x5f4   :  { %3831 = vmatprep.mubr.bf16.mxu0 %v2189_v39  ;;  %v4212_v39 = vld [vmem:[#allocation25 + $0x18] sm:$0xff]  }
 0x5f5   :  { %3832 = vmatmul.mubr.bf16.vlgmr.msra.gmra.mrb[12].mxu0 %v2190_v40  ;;  %v4213_v40 = vld [vmem:[#allocation25 + $0x20] sm:$0xff]  }
 0x5f6   :  { %3836 = vmatpush3.bf16.msra.mxu0 %v4185_v3  ;;  %v2165_v55 = vld [vmem:[#allocation2 + $0x27] sm:$0xff] }
 0x5f7   :  { %3837 = vmatprep.subr.bf16.mxu0 %v4186_v41  ;;  %v2163_v43 = vld [vmem:[#allocation2 + $0x7] sm:$0xff] }
 0x5f8   :  { %v2166_v52 = vld [vmem:[#allocation2 + $0x2f] sm:$0xff] }
 0x5f9   :  { %v2164_v44 = vld [vmem:[#allocation2 + $0xf] sm:$0xff]  ;;  %v2168_v56 = vpack.c.bf16 %v2166_v52, %v2165_v55  ;;  %v4219_v52 = vld [vmem:[#allocation25 + $0x90] sm:$0xff]   ;;  %v4222_v55 = vld [vmem:[#allocation25 + $0xa8] sm:$0xff]  }
 0x5fa   :  { %v2167_v45 = vpack.c.bf16 %v2164_v44, %v2163_v43  ;;  %3838 = vmatpush3.bf16.msra.mxu0 %v4186_v41  ;;  %v2402_v53 = vld [vmem:[#allocation2 + $0x9] sm:$0xff]  ;;  %v2403_v54 = vld [vmem:[#allocation2 + $0x11] sm:$0xff] }
 0x5fb   :  { %3839 = vmatprep.subr.bf16.mxu0 %v4187_v42  ;;  %v2406_v58 = vpack.c.bf16 %v2403_v54, %v2402_v53  ;;  %v2404_v1 = vld [vmem:[#allocation2 + $0x29] sm:$0xff]  ;;  %v2405_v2 = vld [vmem:[#allocation2 + $0x31] sm:$0xff] }
 0x5fc   :  { %3851 = vmatprep.mubr.bf16.mxu0 %v2167_v45  ;;  %v2407_v3 = vpack.c.bf16 %v2405_v2, %v2404_v1  ;;  %v4214_v41 = vld [vmem:[#allocation25 + $0x28] sm:$0xff]   ;;  %v4216_v43 = vld [vmem:[#allocation25 + $0x38] sm:$0xff]   ;;  %v4217_v44 = vld [vmem:[#allocation25 + $0x80] sm:$0xff]  }
 0x5fd   :  { %v4220_v53 = vld [vmem:[#allocation25 + $0x98] sm:$0xff]   ;;  %v4221_v54 = vld [vmem:[#allocation25 + $0xa0] sm:$0xff]   ;;  %v2981_v2 = vld [vmem:[%s5212_s25 + $0x18] sm:$0xff] }
 0x5fe   :  { %3840 = vmatpush3.bf16.msra.mxu0 %v4187_v42  ;;  %v4215_v42 = vld [vmem:[#allocation25 + $0x30] sm:$0xff]   ;;  %v2980_v1 = vld [vmem:[%s5212_s25 + $0x10] sm:$0xff] }
 0x5ff   :  { %3841 = vmatprep.subr.bf16.mxu0 %v4188_v46 }
 0x602   :  { %3842 = vmatpush3.bf16.msra.mxu0 %v4188_v46 }
 0x603   :  { %3843 = vmatprep.subr.bf16.mxu0 %v4189_v47 }
 0x606   :  { %3844 = vmatpush3.bf16.msra.mxu0 %v4189_v47 }
 0x607   :  { %3845 = vmatprep.subr.bf16.mxu0 %v4190_v48 }
 0x60a   :  { %3846 = vmatpush3.bf16.msra.mxu0 %v4190_v48 }
 0x60b   :  { %3847 = vmatprep.subr.bf16.mxu0 %v4191_v49 }
 0x60e   :  { %3848 = vmatpush3.bf16.msra.mxu0 %v4191_v49 }
 0x60f   :  { %3849 = vmatprep.subr.bf16.mxu0 %v4192_v50 }
 0x612   :  { %3850 = vmatpush3.bf16.msra.mxu0 %v4192_v50  ;;  %v4218_v50 = vld [vmem:[#allocation25 + $0x88] sm:$0xff]  }
 0x613   :  { %3855 = vmatprep.subr.bf16.mxu0 %v4193_v51 }
 0x615   :  { %3852 = vmatmul.mubr.bf16.vlgmr.msra.gmra.mrb[12].mxu0 %v2168_v56  ;;  %v4223_v56 = vld [vmem:[#allocation25 + $0xb0] sm:$0xff]  }
 0x616   :  { %3856 = vmatpush3.bf16.msra.mxu0 %v4193_v51  ;;  %3871 = vmatprep.mubr.bf16.mxu0 %v2406_v58 }
 0x617   :  { %3857 = vmatprep.subr.bf16.mxu0 %v4194_v57 }
 0x61a   :  { %3858 = vmatpush3.bf16.msra.mxu0 %v4194_v57  ;;  %v4224_v57 = vld [vmem:[#allocation25 + $0xb8] sm:$0xff]  }
 0x61b   :  { %3859 = vmatprep.subr.bf16.mxu0 %v4195_v59 }
 0x61e   :  { %3860 = vmatpush3.bf16.msra.mxu0 %v4195_v59 }
 0x61f   :  { %3861 = vmatprep.subr.bf16.mxu0 %v4196_v60 }
 0x622   :  { %3862 = vmatpush3.bf16.msra.mxu0 %v4196_v60 }
 0x623   :  { %3863 = vmatprep.subr.bf16.mxu0 %v4197_v61 }
 0x626   :  { %3864 = vmatpush3.bf16.msra.mxu0 %v4197_v61  ;;  %v2978_v61 = vld [vmem:[%s5212_s25] sm:$0xff] }
 0x627   :  { %3865 = vmatprep.subr.bf16.mxu0 %v4198_v62 }
 0x62a   :  { %3866 = vmatpush3.bf16.msra.mxu0 %v4198_v62  ;;  %v2979_v62 = vld [vmem:[%s5212_s25 + $0x8] sm:$0xff] }
 0x62b   :  { %3867 = vmatprep.subr.bf16.mxu0 %v4199_v63 }
 0x62e   :  { %3868 = vmatpush3.bf16.msra.mxu0 %v4199_v63  ;;  %v3971_v63 = vpack.c.bf16 %v2979_v62, %v2978_v61  ;;  %v3308_v62 = vld [vmem:[#allocation27] ss:$0 sm:$0xff] }
 0x62f   :  { %3869 = vmatprep.subr.bf16.mxu0 %v4200_v0 }
 0x632   :  { %3870 = vmatpush3.bf16.msra.mxu0 %v4200_v0  ;;  %v4614_v0 = vmov 0.0|0.0  }
 0x633   :  { %3970 = vmatprep.subr.bf16.mxu0 %v4614_v0 }
 0x635   :  { %3872 = vmatmul.mubr.bf16.vlgmr.msra.gmra.mrb[12].mxu0 %v2407_v3  ;;  %v3974_v3 = vpack.c.bf16 %v2981_v2, %v2980_v1 }
 0x636   :  { %3972 = vmatpush3.bf16.msra.mxu0 %v3971_v63 }
 0x637   :  { %3973 = vmatprep.subr.bf16.mxu0 %v4614_v0 }
 0x63a   :  { %3975 = vmatpush3.bf16.msra.mxu0 %v3974_v3 }
 0x63b   :  { %3976 = vmatprep.subr.bf16.mxu0 %v4614_v0 }
 0x63e   :  { %3978 = vmatpush3.bf16.msra.mxu0 %v3977_v6 }
 0x63f   :  { %3979 = vmatprep.subr.bf16.mxu0 %v4614_v0 }
 0x708   :  { %v3873_v15 = vpop.f32.mrb[12].mxu0 }
 0x709   :  { %v2535_v17 = vmul.f32 %v3873_v15, %v3280_v14  ;;  %v2507_v18 = vpop.f32.mrb[13].mxu0  ;;  %v2987_v15 = vld [vmem:[%s5212_s25 + $0x48] sm:$0xff] }
 0x70a   :  { %v2533_v19 = vmul.f32 %v3280_v14, %v2507_v18  ;;  %v3874_v20 = vpop.f32.mrb[14].mxu0  ;;  %v2989_v18 = vld [vmem:[%s5212_s25 + $0x58] sm:$0xff] }
 0x70b   :  { %v2546_v21 = vadd.f32 %v3281_v16, %v2535_v17  ;;  %v2536_v22 = vmul.f32 %v3874_v20, %v3280_v14  ;;  %v2510_v23 = vpop.f32.mrb[15].mxu0  ;;  %v2988_v17 = vld [vmem:[%s5212_s25 + $0x50] sm:$0xff] }
 0x70c   :  { %v2544_v24 = vadd.f32 %v3281_v16, %v2533_v19  ;;  %v2534_v25 = vmul.f32 %v3280_v14, %v2510_v23  ;;  %v2986_v14 = vld [vmem:[%s5212_s25 + $0x40] sm:$0xff]  ;;  %v3986_v20 = vpack.c.bf16 %v2989_v18, %v2988_v17 }
 0x70d   :  { %v2550_v26 = vmax.f32 %v2546_v21, 0.0  ;;  %v2547_v27 = vadd.f32 %v3281_v16, %v2536_v22  ;;  %v4225_v19 = vld [vmem:[#allocation2] sm:$0xff]  ;;  %v2991_v22 = vld [vmem:[%s5212_s25 + $0x68] sm:$0xff] }
 0x70e   :  { %v2548_v28 = vmax.f32 %v2544_v24, 0.0  ;;  %v2545_v29 = vadd.f32 %v3281_v16, %v2534_v25  ;;  %v3983_v16 = vpack.c.bf16 %v2987_v15, %v2986_v14  ;;  %3967 = vmatprep.mubr.msk.f32.mxu0 %vm4615_vm0, %v4225_v19  ;;  %v2990_v21 = vld [vmem:[%s5212_s25 + $0x60] sm:$0xff]  ;;  %v2992_v24 = vld [vmem:[%s5212_s25 + $0x70] sm:$0xff]  ;;  %v2993_v25 = vld [vmem:[%s5212_s25 + $0x78] sm:$0xff]  ;;  %s4616_s25 = smov [#allocation28]  }
 0x70f   :  { %2554 = vst [vmem:[#allocation3 + $0x28] sm:$0xff] %v2550_v26  ;;  %v2551_v8 = vmax.f32 %v2547_v27, 0.0  ;;  %v3989_v23 = vpack.c.bf16 %v2991_v22, %v2990_v21  ;;  %v3306_v27 = vld [vmem:[%s5253_s16] ss:$0 sm:$0xff]  ;;  %s3084_s10 = sshll.u32 %s4616_s25, 4  ;;  %s3085_s10 = int_to_ptr.vmem [resolvable:$true] %s3084_s10 }
 0x710   :  { %2552 = vst [vmem:[#allocation3 + $0x8] sm:$0xff] %v2548_v28  ;;  %v2549_v30 = vmax.f32 %v2545_v29, 0.0  ;;  %v3307_v29 = vld [vmem:[%s5254_s30] ss:$0 sm:$0xff]  ;;  %s4556_s2 = scalar_lea.vmem %s3085_s10, 32  ;;  %p4561_p9 = scmp.lt.s32.totalorder %s3085_s10, %s3085_s10 }
 0x711   :  { %2555 = vst [vmem:[#allocation3 + $0x30] sm:$0xff] %v2551_v8  ;;  %v2587_v31 = vpack.c.bf16 %v2551_v8, %v2550_v26  ;;  %v3992_v26 = vpack.c.bf16 %v2993_v25, %v2992_v24  ;;  %p4557_p8 = scmp.ne.s32.totalorder %s3085_s10, %s4556_s2  ;;  %p4562_p10 = scmp.lt.s32.totalorder %s4556_s2, %s4556_s2 }
 0x712   :  { %2553 = vst [vmem:[#allocation3 + $0x10] sm:$0xff] %v2549_v30  ;;  %v2586_v9 = vpack.c.bf16 %v2549_v30, %v2548_v28 }
 0x713   :  { %p4563_p11 = por %p4562_p10, %p4561_p9 }
 0x714   :  { %3891 = vmatprep.mubr.bf16.mxu1 %v2586_v9 }
 0x715   :  { %3892 = vmatmul.mubr.bf16.vlgmr.msra.gmra.mrb[12].mxu1 %v2587_v31  ;;  %p4564_p12 = pnand %p4563_p11, %p4557_p8 }
 0x716   :  { %3896 = vmatpush3.bf16.msra.mxu1 %v4209_v13  ;;  %v2562_v48 = vld [vmem:[#allocation3 + $0x27] sm:$0xff]  ;;  %v3980_v13 = vpack.c.bf16 %v2985_v12, %v2984_v7 }
 0x717   :  { %3897 = vmatprep.subr.bf16.mxu1 %v4210_v32  ;;  %v2560_v34 = vld [vmem:[#allocation3 + $0x7] sm:$0xff] }
 0x718   :  { %v2563_v45 = vld [vmem:[#allocation3 + $0x2f] sm:$0xff]  ;;  %3981 = vmatpush3.bf16.msra.mxu0 %v3980_v13 }
 0x719   :  { %v2561_v35 = vld [vmem:[#allocation3 + $0xf] sm:$0xff]  ;;  %v2565_v49 = vpack.c.bf16 %v2563_v45, %v2562_v48  ;;  %3982 = vmatprep.subr.bf16.mxu0 %v4614_v0 }
 0x71a   :  { %v2564_v11 = vpack.c.bf16 %v2561_v35, %v2560_v34  ;;  %3898 = vmatpush3.bf16.msra.mxu1 %v4210_v32  ;;  %v2799_v46 = vld [vmem:[#allocation3 + $0x9] sm:$0xff]  ;;  %v2800_v47 = vld [vmem:[#allocation3 + $0x11] sm:$0xff] }
 0x71b   :  { %3899 = vmatprep.subr.bf16.mxu1 %v4211_v33  ;;  %v2803_v51 = vpack.c.bf16 %v2800_v47, %v2799_v46  ;;  %v2801_v58 = vld [vmem:[#allocation3 + $0x29] sm:$0xff]  ;;  %v2802_v59 = vld [vmem:[#allocation3 + $0x31] sm:$0xff] }
 0x71c   :  { %3911 = vmatprep.mubr.bf16.mxu1 %v2564_v11  ;;  %v2804_v60 = vpack.c.bf16 %v2802_v59, %v2801_v58  ;;  %3984 = vmatpush3.bf16.msra.mxu0 %v3983_v16 }
 0x71d   :  { %3985 = vmatprep.subr.bf16.mxu0 %v4614_v0 }
 0x71e   :  { %3900 = vmatpush3.bf16.msra.mxu1 %v4211_v33 }
 0x71f   :  { %3901 = vmatprep.subr.bf16.mxu1 %v4212_v39 }
 0x720   :  { %3987 = vmatpush3.bf16.msra.mxu0 %v3986_v20 }
 0x721   :  { %3988 = vmatprep.subr.bf16.mxu0 %v4614_v0 }
 0x722   :  { %3902 = vmatpush3.bf16.msra.mxu1 %v4212_v39 }
 0x723   :  { %3903 = vmatprep.subr.bf16.mxu1 %v4213_v40 }
 0x724   :  { %3990 = vmatpush3.bf16.msra.mxu0 %v3989_v23 }
 0x725   :  { %3991 = vmatprep.subr.bf16.mxu0 %v4614_v0 }
 0x726   :  { %3904 = vmatpush3.bf16.msra.mxu1 %v4213_v40 }
 0x727   :  { %3905 = vmatprep.subr.bf16.mxu1 %v4214_v41 }
 0x728   :  { %3993 = vmatpush3.bf16.msra.mxu0 %v3992_v26 }
 0x72a   :  { %3906 = vmatpush3.bf16.msra.mxu1 %v4214_v41 }
 0x72b   :  { %3907 = vmatprep.subr.bf16.mxu1 %v4215_v42 }
 0x72e   :  { %3908 = vmatpush3.bf16.msra.mxu1 %v4215_v42 }
 0x72f   :  { %3909 = vmatprep.subr.bf16.mxu1 %v4216_v43 }
 0x732   :  { %3910 = vmatpush3.bf16.msra.mxu1 %v4216_v43 }
 0x733   :  { %3915 = vmatprep.subr.bf16.mxu1 %v4217_v44 }
 0x735   :  { %3912 = vmatmul.mubr.bf16.vlgmr.msra.gmra.mrb[12].mxu1 %v2565_v49 }
 0x736   :  { %3916 = vmatpush3.bf16.msra.mxu1 %v4217_v44  ;;  %3931 = vmatprep.mubr.bf16.mxu1 %v2803_v51 }
 0x737   :  { %3917 = vmatprep.subr.bf16.mxu1 %v4218_v50 }
 0x73a   :  { %3918 = vmatpush3.bf16.msra.mxu1 %v4218_v50 }
 0x73b   :  { %3919 = vmatprep.subr.bf16.mxu1 %v4219_v52 }
 0x73e   :  { %3920 = vmatpush3.bf16.msra.mxu1 %v4219_v52 }
 0x73f   :  { %3921 = vmatprep.subr.bf16.mxu1 %v4220_v53 }
 0x742   :  { %3922 = vmatpush3.bf16.msra.mxu1 %v4220_v53 }
 0x743   :  { %3923 = vmatprep.subr.bf16.mxu1 %v4221_v54 }
 0x746   :  { %3924 = vmatpush3.bf16.msra.mxu1 %v4221_v54 }
 0x747   :  { %3925 = vmatprep.subr.bf16.mxu1 %v4222_v55 }
 0x74a   :  { %3926 = vmatpush3.bf16.msra.mxu1 %v4222_v55 }
 0x74b   :  { %3927 = vmatprep.subr.bf16.mxu1 %v4223_v56 }
 0x74e   :  { %3928 = vmatpush3.bf16.msra.mxu1 %v4223_v56 }
 0x74f   :  { %3929 = vmatprep.subr.bf16.mxu1 %v4224_v57 }
 0x752   :  { %3930 = vmatpush3.bf16.msra.mxu1 %v4224_v57 }
 0x755   :  { %3932 = vmatmul.mubr.bf16.vlgmr.msra.gmra.mrb[12].mxu1 %v2804_v60 }
 0x828   :  { %v3933_v28 = vpop.f32.mrb[12].mxu1 }
 0x829   :  { %v2932_v8 = vmul.f32 %v3933_v28, %v3306_v27  ;;  %v2904_v30 = vpop.f32.mrb[13].mxu1 }
 0x82a   :  { %v2930_v31 = vmul.f32 %v3306_v27, %v2904_v30  ;;  %v3934_v9 = vpop.f32.mrb[14].mxu1 }
 0x82b   :  { %v2943_v32 = vadd.f32 %v3307_v29, %v2932_v8  ;;  %v2933_v33 = vmul.f32 %v3934_v9, %v3306_v27  ;;  %v2907_v34 = vpop.f32.mrb[15].mxu1 }
 0x82c   :  { %v2941_v35 = vadd.f32 %v3307_v29, %v2930_v31  ;;  %v2931_v11 = vmul.f32 %v3306_v27, %v2907_v34 }
 0x82d   :  { %v2947_v39 = vadd.f32 %v2943_v32, %v5095_v10  ;;  %v2944_v40 = vadd.f32 %v3307_v29, %v2933_v33 }
 0x82e   :  { %v2945_v41 = vadd.f32 %v2941_v35, %v5097_v36  ;;  %v2942_v42 = vadd.f32 %v3307_v29, %v2931_v11 }
 0x82f   :  { %v2951_v43 = vmax.f32 %v2947_v39, 0.0  ;;  %v2948_v44 = vadd.f32 %v2944_v40, %v5100_v37 }
 0x830   :  { %v2949_v45 = vmax.f32 %v2945_v41, 0.0  ;;  %v2946_v46 = vadd.f32 %v2942_v42, %v5103_v38 }
 0x831   :  { %2955 = vst [vmem:[#allocation2 + $0x28] sm:$0xff] %v2951_v43  ;;  %v2952_v47 = vmax.f32 %v2948_v44, 0.0 }
 0x832   :  { %2953 = vst [vmem:[#allocation2 + $0x8] sm:$0xff] %v2949_v45  ;;  %v2950_v48 = vmax.f32 %v2946_v46, 0.0 }
 0x833   :  { %2956 = vst [vmem:[#allocation2 + $0x30] sm:$0xff] %v2952_v47  ;;  %v2968_v49 = vadd.f32 %v2952_v47, %v2951_v43 }
 0x834   :  { %2954 = vst [vmem:[#allocation2 + $0x10] sm:$0xff] %v2950_v48  ;;  %v2961_v50 = vadd.f32 %v2950_v48, %v2949_v45 }
 0x835   :  { %v2969_v51 = vrot.slane %v2968_v49, 4 }
 0x836   :  { %v2962_v10 = vrot.slane %v2961_v50, 4 }
 0x837   :  { %v2970_v52 = vadd.f32 %v2969_v51, %v2968_v49 }
 0x838   :  { %v2963_v53 = vadd.f32 %v2962_v10, %v2961_v50 }
 0x839   :  { %v2971_v36 = vrot.slane %v2970_v52, 2 }
 0x83a   :  { %v2964_v54 = vrot.slane %v2963_v53, 2 }
 0x83b   :  { %v2972_v55 = vadd.f32 %v2971_v36, %v2970_v52 }
 0x83c   :  { %v2965_v56 = vadd.f32 %v2964_v54, %v2963_v53 }
 0x83d   :  { %v2973_v37 = vrot.slane %v2972_v55, 1 }
 0x83e   :  { %v2966_v57 = vrot.slane %v2965_v56, 1 }
 0x83f   :  { %v2974_v58 = vadd.f32 %v2973_v37, %v2972_v55 }
 0x840   :  { %v2967_v38 = vadd.f32 %v2966_v57, %v2965_v56 }
 0x841   :  { %v2977_v59 = vmul.f32 0.0625, %v2974_v58 }
 0x842   :  { %v2976_v60 = vmul.f32 0.0625, %v2967_v38 }
 0x844   :  { %v3004_v61 = vsel %vm3003_vm1, %v2977_v59, %v2976_v60 }
 0x845   :  { %3968 = vmatmul.mubr.f32.vlgmr.msra.gmra.mrb[16].mxu0 %v3004_v61 }
 0x918   :  { %v3072_v63 = vpop.f32.mrb[16].mxu0 }
 0x919   :  { %v3073_v0 = vadd.f32 %v3308_v62, %v3072_v63  ;;  %v3969_v1 = vpop.f32.mrb[17].mxu0 }
 0x91b   :  { %3077 = vst.msk [vmem:[#allocation28] sm:$0x3] %vm3076_vm2, %v3073_v0 }
 0x91c   :  { %4567 = shalt.err (!%p4564_p12)
}
 0x91d   :  { %s5255_s3 = sld [smem:[#allocation52_spill]] }
 0x923   :  { %s4568_s13 = scalar_lea.hbm %s5255_s3, 32 }
 0x924   :  { %p4569_p13 = scmp.ne.s32.totalorder %s5255_s3, %s4568_s13  ;;  %p4572_p0 = scmp.lt.u32.totalorder %s4568_s13, %s5255_s3 }
 0x926   :  { %p4574_p1 = pnand %p4572_p0, %p4569_p13 }
 0x928   :  { %4577 = shalt.err (!%p4574_p1)
}
 0x929   :  { %3087 = dma.vmem_to_hbm [thread:$0]  %s3085_s10, 32, %s5255_s3, [#allocation6]  }
 0x92a   :  { %4594 = dma.done.wait [#allocation6], 32  }
 0x92b   :  { %4595 = vsyncadd [#allocation6], 4294967264 }
 0x92c   :  { %3091 = vsyncpa [#allocation5], 1 }
 0x92d   :  { %3092 = vsyncpa [#allocation8], 1 }
 0x92e   :  { %3093 = vsyncpa [#allocation11], 1 }
 0x92f   :  { %3094 = vsyncpa [#allocation14], 1 }
 0x930   :  { %3095 = vsyncpa [#allocation17], 1 }
 0x931   :  { %3096 = vsyncpa [#allocation20], 1 }
 0x932   :  { %3097 = vsyncpa [#allocation23], 1 }
 0x933   :  { %3098 = vsyncpa [#allocation26], 1 }
 0x934   :  { %3099 = vsyncpa [#allocation6], 1 }

</bundles_post_ra>
